<compile_context>
chip_gen: v7x
topology: tpu7x:2x2x1
jax: 0.10.0
libtpu: 0.0.40
codegen_flags: <defaults>
</compile_context>

<pallas_src>
import functools

import numpy as np
import jax
import jax.numpy as jnp
from jax import lax
from jax.experimental import pallas as pl
from jax.experimental.pallas import tpu as pltpu


def _round_up(n, m):
    return (n + m - 1) // m * m


# ------------------------------- Pallas kernel ------------------------------ #

def _residual_block_kernel(x_ref, mask_ref, w1_ref, b1_ref, w2_ref, b2_ref,
                           o_ref, res_ref, pad_ref, cat_ref, *, C, H, W, P_pad):
    # x_ref    : (1, C, H*W)   f32   unpadded input image
    # mask_ref : (1, P_pad)    f32   1.0 on real output columns, 0.0 elsewhere
    # w*_ref   : (C, 9*C)      bf16  tap-major weights  w[o, (kh*3+kw)*C + i]
    # b*_ref   : (C, 1)        f32
    # o_ref    : (1, C, P_pad) f32   width/lane-padded flattened output
    # res_ref  : (C, P_pad)    f32   scratch: width-padded residual (pad cols stale)
    # pad_ref  : (C, Xw)       bf16  scratch: fully zero-padded image / activation
    # cat_ref  : (9*C, P_pad)  bf16  scratch: stacked shifted slabs (GEMM RHS)
    Wp = W + 2
    S = Wp + 1                    # column where the fully-padded image starts
    Xw = pad_ref.shape[-1]

    maskb = mask_ref[...] != 0.0  # (1, P_pad) True on real output columns

    # ---- width-padded f32 residual built in VMEM (input never padded in HBM).
    # Pad columns of res_ref may hold stale data; every read goes through
    # jnp.where(maskb, ...), which forces them to exact zeros.
    for h in range(H):
        res_ref[:, h * Wp + 1:h * Wp + 1 + W] = x_ref[0, :, h * W:(h + 1) * W]
    resid = jnp.where(maskb, res_ref[...], 0.0)          # (C, P_pad) f32

    # Zero only the never-overwritten border columns of the padded scratch
    # (top pad row / bottom pad row + tail); the interior slab is rewritten
    # below every grid step, so no reliance on scratch persistence.
    pad_ref[:, 0:S] = jnp.zeros((C, S), jnp.bfloat16)
    pad_ref[:, S + P_pad:Xw] = jnp.zeros((C, Xw - S - P_pad), jnp.bfloat16)

    def conv3x3(w_ref):
        # Stack the nine shifted slabs into one (9*C, P_pad) RHS, then a
        # single K = 9*C GEMM on the MXU with f32 accumulation.
        for kh in range(3):
            for kw in range(3):
                t = kh * 3 + kw
                off = kh * Wp + kw
                cat_ref[t * C:(t + 1) * C, :] = pad_ref[:, off:off + P_pad]
        return jnp.dot(w_ref[...], cat_ref[...],
                       preferred_element_type=jnp.float32)        # (C, P_pad)

    # ---- conv1 + bias + ReLU ----
    pad_ref[:, S:S + P_pad] = resid.astype(jnp.bfloat16)
    y = jnp.maximum(conv3x3(w1_ref) + b1_ref[...], 0.0)
    y = jnp.where(maskb, y, 0.0)          # restore exact zero padding for conv2

    # ---- conv2 + bias + residual add + ReLU ----
    pad_ref[:, S:S + P_pad] = y.astype(jnp.bfloat16)
    out = jnp.maximum(conv3x3(w2_ref) + b2_ref[...] + resid, 0.0)
    o_ref[0] = out.astype(o_ref.dtype)


# ------------------------------ Module forward ------------------------------ #

def residual_block(params, x):
    """ResidualBlock forward. x: NCHW float32; returns NCHW float32."""
    B, C, H, W = x.shape
    Wp = W + 2
    P = H * Wp                              # width-padded flattened length
    P_pad = _round_up(P, 128)               # lane-dense GEMM N / output width
    Xw = _round_up(2 * Wp + 2 + P_pad, 128)  # padded-image scratch width

    # No padded copy in HBM: just a free reshape of the unpadded input.
    x_flat = x.astype(jnp.float32).reshape(B, C, H * W)

    # Tap-major weight matrices: w[o, (kh*3+kw)*C + i] = W[o, i, kh, kw].
    w1 = jnp.transpose(params["w1"], (0, 2, 3, 1)).reshape(C, 9 * C).astype(jnp.bfloat16)
    w2 = jnp.transpose(params["w2"], (0, 2, 3, 1)).reshape(C, 9 * C).astype(jnp.bfloat16)
    b1 = params["b1"].reshape(C, 1).astype(jnp.float32)
    b2 = params["b2"].reshape(C, 1).astype(jnp.float32)

    # Real output columns: j = h*Wp + (w+1)  (width pad / lane pad columns = 0).
    col = jnp.arange(P_pad, dtype=jnp.int32)
    mask = ((col < P) & (col % Wp >= 1) & (col % Wp <= W)
            ).astype(jnp.float32).reshape(1, P_pad)

    kernel = functools.partial(_residual_block_kernel, C=C, H=H, W=W, P_pad=P_pad)
    out_flat = pl.pallas_call(
        kernel,
        out_shape=jax.ShapeDtypeStruct((B, C, P_pad), jnp.float32),
        grid=(B,),
        in_specs=[
            pl.BlockSpec((1, C, H * W), lambda b: (b, 0, 0)),   # unpadded input
            pl.BlockSpec((1, P_pad), lambda b: (0, 0)),         # column mask
            pl.BlockSpec((C, 9 * C), lambda b: (0, 0)),         # conv1 weights
            pl.BlockSpec((C, 1), lambda b: (0, 0)),             # bias1
            pl.BlockSpec((C, 9 * C), lambda b: (0, 0)),         # conv2 weights
            pl.BlockSpec((C, 1), lambda b: (0, 0)),             # bias2
        ],
        out_specs=pl.BlockSpec((1, C, P_pad), lambda b: (b, 0, 0)),
        scratch_shapes=[
            pltpu.VMEM((C, P_pad), jnp.float32),       # width-padded f32 residual
            pltpu.VMEM((C, Xw), jnp.bfloat16),         # zero-padded image/activation
            pltpu.VMEM((9 * C, P_pad), jnp.bfloat16),  # stacked-shift GEMM RHS
        ],
        compiler_params=pltpu.CompilerParams(
            dimension_semantics=("parallel",)),
    )(x_flat, mask, w1, b1, w2, b2)

    # Drop the lane-pad tail and the width-pad columns; result is NCHW.
    return out_flat[:, :, :P].reshape(B, C, H, Wp)[:, :, :, 1:W + 1]


# ----------------------------- Params & reference --------------------------- #

def init_params(key, channels):
    k1, k2, k3, k4 = jax.random.split(key, 4)
    s = 1.0 / np.sqrt(channels * 9)
    return {
        "w1": jax.random.normal(k1, (channels, channels, 3, 3), jnp.float32) * s,
        "b1": jax.random.normal(k2, (channels,), jnp.float32) * s,
        "w2": jax.random.normal(k3, (channels, channels, 3, 3), jnp.float32) * s,
        "b2": jax.random.normal(k4, (channels,), jnp.float32) * s,
    }


def reference_forward(params, x):
    """Pure-JAX reference mirroring the PyTorch forward (f32, highest precision)."""
    y = lax.conv_general_dilated(
        x, params["w1"], (1, 1), ((1, 1), (1, 1)),
        dimension_numbers=("NCHW", "OIHW", "NCHW"),
        precision=lax.Precision.HIGHEST)
    y = jnp.maximum(y + params["b1"][None, :, None, None], 0.0)
    y = lax.conv_general_dilated(
        y, params["w2"], (1, 1), ((1, 1), (1, 1)),
        dimension_numbers=("NCHW", "OIHW", "NCHW"),
        precision=lax.Precision.HIGHEST)
    y = y + params["b2"][None, :, None, None] + x
    return jnp.maximum(y, 0.0)


# ----------------------------------- Demo ----------------------------------- #

if __name__ == "__main__":
    key = jax.random.PRNGKey(0)
    k_x, k_p = jax.random.split(key)

    B, C, H, W = 2, 32, 16, 16
    x = jax.random.normal(k_x, (B, C, H, W), jnp.float32)
    params = init_params(k_p, C)

    fwd = jax.jit(residual_block)
    out = jax.block_until_ready(fwd(params, x))
    assert out.shape == (B, C, H, W), out.shape

    ref = reference_forward(params, x)
    # bf16 MXU operands (f32 accumulation, f32 residual path) vs. f32 reference.
    np.testing.assert_allclose(np.asarray(out), np.asarray(ref),
                               rtol=5e-2, atol=5e-2)

    print("KERNEL_OK")
</pallas_src>

<mosaic_0001>
module attributes {stable_mosaic.version = 11 : i64} {
  func.func @_residual_block_kernel(%arg0: i32, %arg1: memref<1x32x256xf32, #tpu.memory_space<vmem>>, %arg2: memref<1x384xf32, #tpu.memory_space<vmem>>, %arg3: memref<32x288xbf16, #tpu.memory_space<vmem>>, %arg4: memref<32x1xf32, #tpu.memory_space<vmem>>, %arg5: memref<32x288xbf16, #tpu.memory_space<vmem>>, %arg6: memref<32x1xf32, #tpu.memory_space<vmem>>, %arg7: memref<1x32x384xf32, #tpu.memory_space<vmem>>, %arg8: memref<32x384xf32, #tpu.memory_space<vmem>>, %arg9: memref<32x512xbf16, #tpu.memory_space<vmem>>, %arg10: memref<288x384xbf16, #tpu.memory_space<vmem>>) attributes {dimension_semantics = [#tpu.dimension_semantics<parallel>], iteration_bounds = array<i64: 2>, scalar_prefetch = 0 : i64, scratch_operands = 3 : i64, tpu.core_type = #tpu.core_type<tc>, window_params = [{transform_indices = @transform_0, window_bounds = array<i64: 1, 32, 256>}, {pipeline_mode = #tpu.pipeline_mode<synchronous>, transform_indices = @transform_1, window_bounds = array<i64: 1, 384>}, {pipeline_mode = #tpu.pipeline_mode<synchronous>, transform_indices = @transform_2, window_bounds = array<i64: 32, 288>}, {pipeline_mode = #tpu.pipeline_mode<synchronous>, transform_indices = @transform_3, window_bounds = array<i64: 32, 1>}, {pipeline_mode = #tpu.pipeline_mode<synchronous>, transform_indices = @transform_4, window_bounds = array<i64: 32, 288>}, {pipeline_mode = #tpu.pipeline_mode<synchronous>, transform_indices = @transform_5, window_bounds = array<i64: 32, 1>}, {transform_indices = @transform_6, window_bounds = array<i64: 1, 32, 384>}]} {
    %c0 = arith.constant 0 : index
    %c0_0 = arith.constant 0 : index
    %0 = vector.load %arg2[%c0, %c0_0] : memref<1x384xf32, #tpu.memory_space<vmem>>, vector<1x384xf32>
    %cst = arith.constant 0.000000e+00 : f32
    %1 = vector.broadcast %cst : f32 to vector<1x384xf32>
    %2 = arith.cmpf one, %0, %1 : vector<1x384xf32>
    %c0_1 = arith.constant 0 : index
    %c0_2 = arith.constant 0 : index
    %c0_3 = arith.constant 0 : index
    %3 = vector.load %arg1[%c0_1, %c0_2, %c0_3] : memref<1x32x256xf32, #tpu.memory_space<vmem>>, vector<1x32x16xf32>
    %4 = vector.shape_cast %3 : vector<1x32x16xf32> to vector<32x16xf32>
    %c0_4 = arith.constant 0 : index
    %c1 = arith.constant 1 : index
    %5 = vector.load %arg8[%c0_4, %c1] : memref<32x384xf32, #tpu.memory_space<vmem>>, vector<32x16xf32>
    tpu.vector_store %arg8[%c0_4, %c1], %4 {strides = array<i32>} : memref<32x384xf32, #tpu.memory_space<vmem>>, vector<32x16xf32>,
    %c0_5 = arith.constant 0 : index
    %c0_6 = arith.constant 0 : index
    %c16 = arith.constant 16 : index
    %6 = vector.load %arg1[%c0_5, %c0_6, %c16] : memref<1x32x256xf32, #tpu.memory_space<vmem>>, vector<1x32x16xf32>
    %7 = vector.shape_cast %6 : vector<1x32x16xf32> to vector<32x16xf32>
    %c0_7 = arith.constant 0 : index
    %c19 = arith.constant 19 : index
    %8 = vector.load %arg8[%c0_7, %c19] : memref<32x384xf32, #tpu.memory_space<vmem>>, vector<32x16xf32>
    tpu.vector_store %arg8[%c0_7, %c19], %7 {strides = array<i32>} : memref<32x384xf32, #tpu.memory_space<vmem>>, vector<32x16xf32>,
    %c0_8 = arith.constant 0 : index
    %c0_9 = arith.constant 0 : index
    %c32 = arith.constant 32 : index
    %9 = vector.load %arg1[%c0_8, %c0_9, %c32] : memref<1x32x256xf32, #tpu.memory_space<vmem>>, vector<1x32x16xf32>
    %10 = vector.shape_cast %9 : vector<1x32x16xf32> to vector<32x16xf32>
    %c0_10 = arith.constant 0 : index
    %c37 = arith.constant 37 : index
    %11 = vector.load %arg8[%c0_10, %c37] : memref<32x384xf32, #tpu.memory_space<vmem>>, vector<32x16xf32>
    tpu.vector_store %arg8[%c0_10, %c37], %10 {strides = array<i32>} : memref<32x384xf32, #tpu.memory_space<vmem>>, vector<32x16xf32>,
    %c0_11 = arith.constant 0 : index
    %c0_12 = arith.constant 0 : index
    %c48 = arith.constant 48 : index
    %12 = vector.load %arg1[%c0_11, %c0_12, %c48] : memref<1x32x256xf32, #tpu.memory_space<vmem>>, vector<1x32x16xf32>
    %13 = vector.shape_cast %12 : vector<1x32x16xf32> to vector<32x16xf32>
    %c0_13 = arith.constant 0 : index
    %c55 = arith.constant 55 : index
    %14 = vector.load %arg8[%c0_13, %c55] : memref<32x384xf32, #tpu.memory_space<vmem>>, vector<32x16xf32>
    tpu.vector_store %arg8[%c0_13, %c55], %13 {strides = array<i32>} : memref<32x384xf32, #tpu.memory_space<vmem>>, vector<32x16xf32>,
    %c0_14 = arith.constant 0 : index
    %c0_15 = arith.constant 0 : index
    %c64 = arith.constant 64 : index
    %15 = vector.load %arg1[%c0_14, %c0_15, %c64] : memref<1x32x256xf32, #tpu.memory_space<vmem>>, vector<1x32x16xf32>
    %16 = vector.shape_cast %15 : vector<1x32x16xf32> to vector<32x16xf32>
    %c0_16 = arith.constant 0 : index
    %c73 = arith.constant 73 : index
    %17 = vector.load %arg8[%c0_16, %c73] : memref<32x384xf32, #tpu.memory_space<vmem>>, vector<32x16xf32>
    tpu.vector_store %arg8[%c0_16, %c73], %16 {strides = array<i32>} : memref<32x384xf32, #tpu.memory_space<vmem>>, vector<32x16xf32>,
    %c0_17 = arith.constant 0 : index
    %c0_18 = arith.constant 0 : index
    %c80 = arith.constant 80 : index
    %18 = vector.load %arg1[%c0_17, %c0_18, %c80] : memref<1x32x256xf32, #tpu.memory_space<vmem>>, vector<1x32x16xf32>
    %19 = vector.shape_cast %18 : vector<1x32x16xf32> to vector<32x16xf32>
    %c0_19 = arith.constant 0 : index
    %c91 = arith.constant 91 : index
    %20 = vector.load %arg8[%c0_19, %c91] : memref<32x384xf32, #tpu.memory_space<vmem>>, vector<32x16xf32>
    tpu.vector_store %arg8[%c0_19, %c91], %19 {strides = array<i32>} : memref<32x384xf32, #tpu.memory_space<vmem>>, vector<32x16xf32>,
    %c0_20 = arith.constant 0 : index
    %c0_21 = arith.constant 0 : index
    %c96 = arith.constant 96 : index
    %21 = vector.load %arg1[%c0_20, %c0_21, %c96] : memref<1x32x256xf32, #tpu.memory_space<vmem>>, vector<1x32x16xf32>
    %22 = vector.shape_cast %21 : vector<1x32x16xf32> to vector<32x16xf32>
    %c0_22 = arith.constant 0 : index
    %c109 = arith.constant 109 : index
    %23 = vector.load %arg8[%c0_22, %c109] : memref<32x384xf32, #tpu.memory_space<vmem>>, vector<32x16xf32>
    tpu.vector_store %arg8[%c0_22, %c109], %22 {strides = array<i32>} : memref<32x384xf32, #tpu.memory_space<vmem>>, vector<32x16xf32>,
    %c0_23 = arith.constant 0 : index
    %c0_24 = arith.constant 0 : index
    %c112 = arith.constant 112 : index
    %24 = vector.load %arg1[%c0_23, %c0_24, %c112] : memref<1x32x256xf32, #tpu.memory_space<vmem>>, vector<1x32x16xf32>
    %25 = vector.shape_cast %24 : vector<1x32x16xf32> to vector<32x16xf32>
    %c0_25 = arith.constant 0 : index
    %c127 = arith.constant 127 : index
    %26 = vector.load %arg8[%c0_25, %c127] : memref<32x384xf32, #tpu.memory_space<vmem>>, vector<32x16xf32>
    tpu.vector_store %arg8[%c0_25, %c127], %25 {strides = array<i32>} : memref<32x384xf32, #tpu.memory_space<vmem>>, vector<32x16xf32>,
    %c0_26 = arith.constant 0 : index
    %c0_27 = arith.constant 0 : index
    %c128 = arith.constant 128 : index
    %27 = vector.load %arg1[%c0_26, %c0_27, %c128] : memref<1x32x256xf32, #tpu.memory_space<vmem>>, vector<1x32x16xf32>
    %28 = vector.shape_cast %27 : vector<1x32x16xf32> to vector<32x16xf32>
    %c0_28 = arith.constant 0 : index
    %c145 = arith.constant 145 : index
    %29 = vector.load %arg8[%c0_28, %c145] : memref<32x384xf32, #tpu.memory_space<vmem>>, vector<32x16xf32>
    tpu.vector_store %arg8[%c0_28, %c145], %28 {strides = array<i32>} : memref<32x384xf32, #tpu.memory_space<vmem>>, vector<32x16xf32>,
    %c0_29 = arith.constant 0 : index
    %c0_30 = arith.constant 0 : index
    %c144 = arith.constant 144 : index
    %30 = vector.load %arg1[%c0_29, %c0_30, %c144] : memref<1x32x256xf32, #tpu.memory_space<vmem>>, vector<1x32x16xf32>
    %31 = vector.shape_cast %30 : vector<1x32x16xf32> to vector<32x16xf32>
    %c0_31 = arith.constant 0 : index
    %c163 = arith.constant 163 : index
    %32 = vector.load %arg8[%c0_31, %c163] : memref<32x384xf32, #tpu.memory_space<vmem>>, vector<32x16xf32>
    tpu.vector_store %arg8[%c0_31, %c163], %31 {strides = array<i32>} : memref<32x384xf32, #tpu.memory_space<vmem>>, vector<32x16xf32>,
    %c0_32 = arith.constant 0 : index
    %c0_33 = arith.constant 0 : index
    %c160 = arith.constant 160 : index
    %33 = vector.load %arg1[%c0_32, %c0_33, %c160] : memref<1x32x256xf32, #tpu.memory_space<vmem>>, vector<1x32x16xf32>
    %34 = vector.shape_cast %33 : vector<1x32x16xf32> to vector<32x16xf32>
    %c0_34 = arith.constant 0 : index
    %c181 = arith.constant 181 : index
    %35 = vector.load %arg8[%c0_34, %c181] : memref<32x384xf32, #tpu.memory_space<vmem>>, vector<32x16xf32>
    tpu.vector_store %arg8[%c0_34, %c181], %34 {strides = array<i32>} : memref<32x384xf32, #tpu.memory_space<vmem>>, vector<32x16xf32>,
    %c0_35 = arith.constant 0 : index
    %c0_36 = arith.constant 0 : index
    %c176 = arith.constant 176 : index
    %36 = vector.load %arg1[%c0_35, %c0_36, %c176] : memref<1x32x256xf32, #tpu.memory_space<vmem>>, vector<1x32x16xf32>
    %37 = vector.shape_cast %36 : vector<1x32x16xf32> to vector<32x16xf32>
    %c0_37 = arith.constant 0 : index
    %c199 = arith.constant 199 : index
    %38 = vector.load %arg8[%c0_37, %c199] : memref<32x384xf32, #tpu.memory_space<vmem>>, vector<32x16xf32>
    tpu.vector_store %arg8[%c0_37, %c199], %37 {strides = array<i32>} : memref<32x384xf32, #tpu.memory_space<vmem>>, vector<32x16xf32>,
    %c0_38 = arith.constant 0 : index
    %c0_39 = arith.constant 0 : index
    %c192 = arith.constant 192 : index
    %39 = vector.load %arg1[%c0_38, %c0_39, %c192] : memref<1x32x256xf32, #tpu.memory_space<vmem>>, vector<1x32x16xf32>
    %40 = vector.shape_cast %39 : vector<1x32x16xf32> to vector<32x16xf32>
    %c0_40 = arith.constant 0 : index
    %c217 = arith.constant 217 : index
    %41 = vector.load %arg8[%c0_40, %c217] : memref<32x384xf32, #tpu.memory_space<vmem>>, vector<32x16xf32>
    tpu.vector_store %arg8[%c0_40, %c217], %40 {strides = array<i32>} : memref<32x384xf32, #tpu.memory_space<vmem>>, vector<32x16xf32>,
    %c0_41 = arith.constant 0 : index
    %c0_42 = arith.constant 0 : index
    %c208 = arith.constant 208 : index
    %42 = vector.load %arg1[%c0_41, %c0_42, %c208] : memref<1x32x256xf32, #tpu.memory_space<vmem>>, vector<1x32x16xf32>
    %43 = vector.shape_cast %42 : vector<1x32x16xf32> to vector<32x16xf32>
    %c0_43 = arith.constant 0 : index
    %c235 = arith.constant 235 : index
    %44 = vector.load %arg8[%c0_43, %c235] : memref<32x384xf32, #tpu.memory_space<vmem>>, vector<32x16xf32>
    tpu.vector_store %arg8[%c0_43, %c235], %43 {strides = array<i32>} : memref<32x384xf32, #tpu.memory_space<vmem>>, vector<32x16xf32>,
    %c0_44 = arith.constant 0 : index
    %c0_45 = arith.constant 0 : index
    %c224 = arith.constant 224 : index
    %45 = vector.load %arg1[%c0_44, %c0_45, %c224] : memref<1x32x256xf32, #tpu.memory_space<vmem>>, vector<1x32x16xf32>
    %46 = vector.shape_cast %45 : vector<1x32x16xf32> to vector<32x16xf32>
    %c0_46 = arith.constant 0 : index
    %c253 = arith.constant 253 : index
    %47 = vector.load %arg8[%c0_46, %c253] : memref<32x384xf32, #tpu.memory_space<vmem>>, vector<32x16xf32>
    tpu.vector_store %arg8[%c0_46, %c253], %46 {strides = array<i32>} : memref<32x384xf32, #tpu.memory_space<vmem>>, vector<32x16xf32>,
    %c0_47 = arith.constant 0 : index
    %c0_48 = arith.constant 0 : index
    %c240 = arith.constant 240 : index
    %48 = vector.load %arg1[%c0_47, %c0_48, %c240] : memref<1x32x256xf32, #tpu.memory_space<vmem>>, vector<1x32x16xf32>
    %49 = vector.shape_cast %48 : vector<1x32x16xf32> to vector<32x16xf32>
    %c0_49 = arith.constant 0 : index
    %c271 = arith.constant 271 : index
    %50 = vector.load %arg8[%c0_49, %c271] : memref<32x384xf32, #tpu.memory_space<vmem>>, vector<32x16xf32>
    tpu.vector_store %arg8[%c0_49, %c271], %49 {strides = array<i32>} : memref<32x384xf32, #tpu.memory_space<vmem>>, vector<32x16xf32>,
    %c0_50 = arith.constant 0 : index
    %c0_51 = arith.constant 0 : index
    %51 = vector.load %arg8[%c0_50, %c0_51] : memref<32x384xf32, #tpu.memory_space<vmem>>, vector<32x384xf32>
    %cst_52 = arith.constant 0.000000e+00 : f32
    %52 = vector.shape_cast %2 : vector<1x384xi1> to vector<1x384xi1>
    %53 = vector.broadcast %52 : vector<1x384xi1> to vector<32x384xi1>
    %54 = vector.broadcast %cst_52 : f32 to vector<32x384xf32>
    %55 = arith.select %53, %51, %54 : vector<32x384xi1>, vector<32x384xf32>
    %cst_53 = arith.constant 0.000000e+00 : bf16
    %56 = vector.broadcast %cst_53 : bf16 to vector<32x19xbf16>
    %c0_54 = arith.constant 0 : index
    %c0_55 = arith.constant 0 : index
    %57 = vector.load %arg9[%c0_54, %c0_55] : memref<32x512xbf16, #tpu.memory_space<vmem>>, vector<32x19xbf16>
    tpu.vector_store %arg9[%c0_54, %c0_55], %56 {strides = array<i32>} : memref<32x512xbf16, #tpu.memory_space<vmem>>, vector<32x19xbf16>,
    %cst_56 = arith.constant 0.000000e+00 : bf16
    %58 = vector.broadcast %cst_56 : bf16 to vector<32x109xbf16>
    %c0_57 = arith.constant 0 : index
    %c403 = arith.constant 403 : index
    %59 = vector.load %arg9[%c0_57, %c403] : memref<32x512xbf16, #tpu.memory_space<vmem>>, vector<32x109xbf16>
    tpu.vector_store %arg9[%c0_57, %c403], %58 {strides = array<i32>} : memref<32x512xbf16, #tpu.memory_space<vmem>>, vector<32x109xbf16>,
    %60 = arith.truncf %55 : vector<32x384xf32> to vector<32x384xbf16>
    %c0_58 = arith.constant 0 : index
    %c19_59 = arith.constant 19 : index
    %61 = vector.load %arg9[%c0_58, %c19_59] : memref<32x512xbf16, #tpu.memory_space<vmem>>, vector<32x384xbf16>
    tpu.vector_store %arg9[%c0_58, %c19_59], %60 {strides = array<i32>} : memref<32x512xbf16, #tpu.memory_space<vmem>>, vector<32x384xbf16>,
    %c0_60 = arith.constant 0 : index
    %c0_61 = arith.constant 0 : index
    %62 = vector.load %arg9[%c0_60, %c0_61] : memref<32x512xbf16, #tpu.memory_space<vmem>>, vector<32x384xbf16>
    %c0_62 = arith.constant 0 : index
    %c0_63 = arith.constant 0 : index
    %63 = vector.load %arg10[%c0_62, %c0_63] : memref<288x384xbf16, #tpu.memory_space<vmem>>, vector<32x384xbf16>
    tpu.vector_store %arg10[%c0_62, %c0_63], %62 {strides = array<i32>} : memref<288x384xbf16, #tpu.memory_space<vmem>>, vector<32x384xbf16>,
    %c0_64 = arith.constant 0 : index
    %c1_65 = arith.constant 1 : index
    %64 = vector.load %arg9[%c0_64, %c1_65] : memref<32x512xbf16, #tpu.memory_space<vmem>>, vector<32x384xbf16>
    %c32_66 = arith.constant 32 : index
    %c0_67 = arith.constant 0 : index
    %65 = vector.load %arg10[%c32_66, %c0_67] : memref<288x384xbf16, #tpu.memory_space<vmem>>, vector<32x384xbf16>
    tpu.vector_store %arg10[%c32_66, %c0_67], %64 {strides = array<i32>} : memref<288x384xbf16, #tpu.memory_space<vmem>>, vector<32x384xbf16>,
    %c0_68 = arith.constant 0 : index
    %c2 = arith.constant 2 : index
    %66 = vector.load %arg9[%c0_68, %c2] : memref<32x512xbf16, #tpu.memory_space<vmem>>, vector<32x384xbf16>
    %c64_69 = arith.constant 64 : index
    %c0_70 = arith.constant 0 : index
    %67 = vector.load %arg10[%c64_69, %c0_70] : memref<288x384xbf16, #tpu.memory_space<vmem>>, vector<32x384xbf16>
    tpu.vector_store %arg10[%c64_69, %c0_70], %66 {strides = array<i32>} : memref<288x384xbf16, #tpu.memory_space<vmem>>, vector<32x384xbf16>,
    %c0_71 = arith.constant 0 : index
    %c18 = arith.constant 18 : index
    %68 = vector.load %arg9[%c0_71, %c18] : memref<32x512xbf16, #tpu.memory_space<vmem>>, vector<32x384xbf16>
    %c96_72 = arith.constant 96 : index
    %c0_73 = arith.constant 0 : index
    %69 = vector.load %arg10[%c96_72, %c0_73] : memref<288x384xbf16, #tpu.memory_space<vmem>>, vector<32x384xbf16>
    tpu.vector_store %arg10[%c96_72, %c0_73], %68 {strides = array<i32>} : memref<288x384xbf16, #tpu.memory_space<vmem>>, vector<32x384xbf16>,
    %c0_74 = arith.constant 0 : index
    %c19_75 = arith.constant 19 : index
    %70 = vector.load %arg9[%c0_74, %c19_75] : memref<32x512xbf16, #tpu.memory_space<vmem>>, vector<32x384xbf16>
    %c128_76 = arith.constant 128 : index
    %c0_77 = arith.constant 0 : index
    %71 = vector.load %arg10[%c128_76, %c0_77] : memref<288x384xbf16, #tpu.memory_space<vmem>>, vector<32x384xbf16>
    tpu.vector_store %arg10[%c128_76, %c0_77], %70 {strides = array<i32>} : memref<288x384xbf16, #tpu.memory_space<vmem>>, vector<32x384xbf16>,
    %c0_78 = arith.constant 0 : index
    %c20 = arith.constant 20 : index
    %72 = vector.load %arg9[%c0_78, %c20] : memref<32x512xbf16, #tpu.memory_space<vmem>>, vector<32x384xbf16>
    %c160_79 = arith.constant 160 : index
    %c0_80 = arith.constant 0 : index
    %73 = vector.load %arg10[%c160_79, %c0_80] : memref<288x384xbf16, #tpu.memory_space<vmem>>, vector<32x384xbf16>
    tpu.vector_store %arg10[%c160_79, %c0_80], %72 {strides = array<i32>} : memref<288x384xbf16, #tpu.memory_space<vmem>>, vector<32x384xbf16>,
    %c0_81 = arith.constant 0 : index
    %c36 = arith.constant 36 : index
    %74 = vector.load %arg9[%c0_81, %c36] : memref<32x512xbf16, #tpu.memory_space<vmem>>, vector<32x384xbf16>
    %c192_82 = arith.constant 192 : index
    %c0_83 = arith.constant 0 : index
    %75 = vector.load %arg10[%c192_82, %c0_83] : memref<288x384xbf16, #tpu.memory_space<vmem>>, vector<32x384xbf16>
    tpu.vector_store %arg10[%c192_82, %c0_83], %74 {strides = array<i32>} : memref<288x384xbf16, #tpu.memory_space<vmem>>, vector<32x384xbf16>,
    %c0_84 = arith.constant 0 : index
    %c37_85 = arith.constant 37 : index
    %76 = vector.load %arg9[%c0_84, %c37_85] : memref<32x512xbf16, #tpu.memory_space<vmem>>, vector<32x384xbf16>
    %c224_86 = arith.constant 224 : index
    %c0_87 = arith.constant 0 : index
    %77 = vector.load %arg10[%c224_86, %c0_87] : memref<288x384xbf16, #tpu.memory_space<vmem>>, vector<32x384xbf16>
    tpu.vector_store %arg10[%c224_86, %c0_87], %76 {strides = array<i32>} : memref<288x384xbf16, #tpu.memory_space<vmem>>, vector<32x384xbf16>,
    %c0_88 = arith.constant 0 : index
    %c38 = arith.constant 38 : index
    %78 = vector.load %arg9[%c0_88, %c38] : memref<32x512xbf16, #tpu.memory_space<vmem>>, vector<32x384xbf16>
    %c256 = arith.constant 256 : index
    %c0_89 = arith.constant 0 : index
    %79 = vector.load %arg10[%c256, %c0_89] : memref<288x384xbf16, #tpu.memory_space<vmem>>, vector<32x384xbf16>
    tpu.vector_store %arg10[%c256, %c0_89], %78 {strides = array<i32>} : memref<288x384xbf16, #tpu.memory_space<vmem>>, vector<32x384xbf16>,
    %c0_90 = arith.constant 0 : index
    %c0_91 = arith.constant 0 : index
    %80 = vector.load %arg3[%c0_90, %c0_91] : memref<32x288xbf16, #tpu.memory_space<vmem>>, vector<32x288xbf16>
    %c0_92 = arith.constant 0 : index
    %c0_93 = arith.constant 0 : index
    %81 = vector.load %arg10[%c0_92, %c0_93] : memref<288x384xbf16, #tpu.memory_space<vmem>>, vector<288x384xbf16>
    %cst_94 = arith.constant dense<0.000000e+00> : vector<32x384xf32>
    %82 = tpu.matmul %80, %81, %cst_94 {dimension_numbers = #tpu.dot_dimension_numbers<[1], [0], [0], [1], [0, 0, 1, 1], [], []>} : vector<32x288xbf16>, vector<288x384xbf16>, vector<32x384xf32> -> vector<32x384xf32>
    %c0_95 = arith.constant 0 : index
    %c0_96 = arith.constant 0 : index
    %83 = vector.load %arg4[%c0_95, %c0_96] : memref<32x1xf32, #tpu.memory_space<vmem>>, vector<32x1xf32>
    %84 = vector.broadcast %83 : vector<32x1xf32> to vector<32x384xf32>
    %85 = arith.addf %82, %84 : vector<32x384xf32>
    %cst_97 = arith.constant 0.000000e+00 : f32
    %86 = vector.broadcast %cst_97 : f32 to vector<32x384xf32>
    %87 = arith.maximumf %85, %86 : vector<32x384xf32>
    %cst_98 = arith.constant 0.000000e+00 : f32
    %88 = vector.shape_cast %2 : vector<1x384xi1> to vector<1x384xi1>
    %89 = vector.broadcast %88 : vector<1x384xi1> to vector<32x384xi1>
    %90 = vector.broadcast %cst_98 : f32 to vector<32x384xf32>
    %91 = arith.select %89, %87, %90 : vector<32x384xi1>, vector<32x384xf32>
    %92 = arith.truncf %91 : vector<32x384xf32> to vector<32x384xbf16>
    %c0_99 = arith.constant 0 : index
    %c19_100 = arith.constant 19 : index
    %93 = vector.load %arg9[%c0_99, %c19_100] : memref<32x512xbf16, #tpu.memory_space<vmem>>, vector<32x384xbf16>
    tpu.vector_store %arg9[%c0_99, %c19_100], %92 {strides = array<i32>} : memref<32x512xbf16, #tpu.memory_space<vmem>>, vector<32x384xbf16>,
    %c0_101 = arith.constant 0 : index
    %c0_102 = arith.constant 0 : index
    %94 = vector.load %arg9[%c0_101, %c0_102] : memref<32x512xbf16, #tpu.memory_space<vmem>>, vector<32x384xbf16>
    %c0_103 = arith.constant 0 : index
    %c0_104 = arith.constant 0 : index
    %95 = vector.load %arg10[%c0_103, %c0_104] : memref<288x384xbf16, #tpu.memory_space<vmem>>, vector<32x384xbf16>
    tpu.vector_store %arg10[%c0_103, %c0_104], %94 {strides = array<i32>} : memref<288x384xbf16, #tpu.memory_space<vmem>>, vector<32x384xbf16>,
    %c0_105 = arith.constant 0 : index
    %c1_106 = arith.constant 1 : index
    %96 = vector.load %arg9[%c0_105, %c1_106] : memref<32x512xbf16, #tpu.memory_space<vmem>>, vector<32x384xbf16>
    %c32_107 = arith.constant 32 : index
    %c0_108 = arith.constant 0 : index
    %97 = vector.load %arg10[%c32_107, %c0_108] : memref<288x384xbf16, #tpu.memory_space<vmem>>, vector<32x384xbf16>
    tpu.vector_store %arg10[%c32_107, %c0_108], %96 {strides = array<i32>} : memref<288x384xbf16, #tpu.memory_space<vmem>>, vector<32x384xbf16>,
    %c0_109 = arith.constant 0 : index
    %c2_110 = arith.constant 2 : index
    %98 = vector.load %arg9[%c0_109, %c2_110] : memref<32x512xbf16, #tpu.memory_space<vmem>>, vector<32x384xbf16>
    %c64_111 = arith.constant 64 : index
    %c0_112 = arith.constant 0 : index
    %99 = vector.load %arg10[%c64_111, %c0_112] : memref<288x384xbf16, #tpu.memory_space<vmem>>, vector<32x384xbf16>
    tpu.vector_store %arg10[%c64_111, %c0_112], %98 {strides = array<i32>} : memref<288x384xbf16, #tpu.memory_space<vmem>>, vector<32x384xbf16>,
    %c0_113 = arith.constant 0 : index
    %c18_114 = arith.constant 18 : index
    %100 = vector.load %arg9[%c0_113, %c18_114] : memref<32x512xbf16, #tpu.memory_space<vmem>>, vector<32x384xbf16>
    %c96_115 = arith.constant 96 : index
    %c0_116 = arith.constant 0 : index
    %101 = vector.load %arg10[%c96_115, %c0_116] : memref<288x384xbf16, #tpu.memory_space<vmem>>, vector<32x384xbf16>
    tpu.vector_store %arg10[%c96_115, %c0_116], %100 {strides = array<i32>} : memref<288x384xbf16, #tpu.memory_space<vmem>>, vector<32x384xbf16>,
    %c0_117 = arith.constant 0 : index
    %c19_118 = arith.constant 19 : index
    %102 = vector.load %arg9[%c0_117, %c19_118] : memref<32x512xbf16, #tpu.memory_space<vmem>>, vector<32x384xbf16>
    %c128_119 = arith.constant 128 : index
    %c0_120 = arith.constant 0 : index
    %103 = vector.load %arg10[%c128_119, %c0_120] : memref<288x384xbf16, #tpu.memory_space<vmem>>, vector<32x384xbf16>
    tpu.vector_store %arg10[%c128_119, %c0_120], %102 {strides = array<i32>} : memref<288x384xbf16, #tpu.memory_space<vmem>>, vector<32x384xbf16>,
    %c0_121 = arith.constant 0 : index
    %c20_122 = arith.constant 20 : index
    %104 = vector.load %arg9[%c0_121, %c20_122] : memref<32x512xbf16, #tpu.memory_space<vmem>>, vector<32x384xbf16>
    %c160_123 = arith.constant 160 : index
    %c0_124 = arith.constant 0 : index
    %105 = vector.load %arg10[%c160_123, %c0_124] : memref<288x384xbf16, #tpu.memory_space<vmem>>, vector<32x384xbf16>
    tpu.vector_store %arg10[%c160_123, %c0_124], %104 {strides = array<i32>} : memref<288x384xbf16, #tpu.memory_space<vmem>>, vector<32x384xbf16>,
    %c0_125 = arith.constant 0 : index
    %c36_126 = arith.constant 36 : index
    %106 = vector.load %arg9[%c0_125, %c36_126] : memref<32x512xbf16, #tpu.memory_space<vmem>>, vector<32x384xbf16>
    %c192_127 = arith.constant 192 : index
    %c0_128 = arith.constant 0 : index
    %107 = vector.load %arg10[%c192_127, %c0_128] : memref<288x384xbf16, #tpu.memory_space<vmem>>, vector<32x384xbf16>
    tpu.vector_store %arg10[%c192_127, %c0_128], %106 {strides = array<i32>} : memref<288x384xbf16, #tpu.memory_space<vmem>>, vector<32x384xbf16>,
    %c0_129 = arith.constant 0 : index
    %c37_130 = arith.constant 37 : index
    %108 = vector.load %arg9[%c0_129, %c37_130] : memref<32x512xbf16, #tpu.memory_space<vmem>>, vector<32x384xbf16>
    %c224_131 = arith.constant 224 : index
    %c0_132 = arith.constant 0 : index
    %109 = vector.load %arg10[%c224_131, %c0_132] : memref<288x384xbf16, #tpu.memory_space<vmem>>, vector<32x384xbf16>
    tpu.vector_store %arg10[%c224_131, %c0_132], %108 {strides = array<i32>} : memref<288x384xbf16, #tpu.memory_space<vmem>>, vector<32x384xbf16>,
    %c0_133 = arith.constant 0 : index
    %c38_134 = arith.constant 38 : index
    %110 = vector.load %arg9[%c0_133, %c38_134] : memref<32x512xbf16, #tpu.memory_space<vmem>>, vector<32x384xbf16>
    %c256_135 = arith.constant 256 : index
    %c0_136 = arith.constant 0 : index
    %111 = vector.load %arg10[%c256_135, %c0_136] : memref<288x384xbf16, #tpu.memory_space<vmem>>, vector<32x384xbf16>
    tpu.vector_store %arg10[%c256_135, %c0_136], %110 {strides = array<i32>} : memref<288x384xbf16, #tpu.memory_space<vmem>>, vector<32x384xbf16>,
    %c0_137 = arith.constant 0 : index
    %c0_138 = arith.constant 0 : index
    %112 = vector.load %arg5[%c0_137, %c0_138] : memref<32x288xbf16, #tpu.memory_space<vmem>>, vector<32x288xbf16>
    %c0_139 = arith.constant 0 : index
    %c0_140 = arith.constant 0 : index
    %113 = vector.load %arg10[%c0_139, %c0_140] : memref<288x384xbf16, #tpu.memory_space<vmem>>, vector<288x384xbf16>
    %cst_141 = arith.constant dense<0.000000e+00> : vector<32x384xf32>
    %114 = tpu.matmul %112, %113, %cst_141 {dimension_numbers = #tpu.dot_dimension_numbers<[1], [0], [0], [1], [0, 0, 1, 1], [], []>} : vector<32x288xbf16>, vector<288x384xbf16>, vector<32x384xf32> -> vector<32x384xf32>
    %c0_142 = arith.constant 0 : index
    %c0_143 = arith.constant 0 : index
    %115 = vector.load %arg6[%c0_142, %c0_143] : memref<32x1xf32, #tpu.memory_space<vmem>>, vector<32x1xf32>
    %116 = vector.broadcast %115 : vector<32x1xf32> to vector<32x384xf32>
    %117 = arith.addf %114, %116 : vector<32x384xf32>
    %118 = arith.addf %117, %55 : vector<32x384xf32>
    %cst_144 = arith.constant 0.000000e+00 : f32
    %119 = vector.broadcast %cst_144 : f32 to vector<32x384xf32>
    %120 = arith.maximumf %118, %119 : vector<32x384xf32>
    %c0_145 = arith.constant 0 : index
    %c0_146 = arith.constant 0 : index
    %c0_147 = arith.constant 0 : index
    %121 = vector.load %arg7[%c0_145, %c0_146, %c0_147] : memref<1x32x384xf32, #tpu.memory_space<vmem>>, vector<1x32x384xf32>
    %122 = vector.shape_cast %121 : vector<1x32x384xf32> to vector<32x384xf32>
    %123 = vector.shape_cast %120 : vector<32x384xf32> to vector<1x32x384xf32>
    tpu.vector_store %arg7[%c0_145, %c0_146, %c0_147], %123 {strides = array<i32>} : memref<1x32x384xf32, #tpu.memory_space<vmem>>, vector<1x32x384xf32>,
    return
  }
  func.func @transform_0(%arg0: i32) -> (i32, i32, i32) {
    %c0_i32 = arith.constant 0 : i32
    %c0_i32_0 = arith.constant 0 : i32
    %c0_i32_1 = arith.constant 0 : i32
    return %arg0, %c0_i32, %c0_i32_0 : i32, i32, i32
  }
  func.func @transform_1(%arg0: i32) -> (i32, i32) {
    %c0_i32 = arith.constant 0 : i32
    %c0_i32_0 = arith.constant 0 : i32
    %c0_i32_1 = arith.constant 0 : i32
    return %c0_i32, %c0_i32_0 : i32, i32
  }
  func.func @transform_2(%arg0: i32) -> (i32, i32) {
    %c0_i32 = arith.constant 0 : i32
    %c0_i32_0 = arith.constant 0 : i32
    %c0_i32_1 = arith.constant 0 : i32
    return %c0_i32, %c0_i32_0 : i32, i32
  }
  func.func @transform_3(%arg0: i32) -> (i32, i32) {
    %c0_i32 = arith.constant 0 : i32
    %c0_i32_0 = arith.constant 0 : i32
    %c0_i32_1 = arith.constant 0 : i32
    return %c0_i32, %c0_i32_0 : i32, i32
  }
  func.func @transform_4(%arg0: i32) -> (i32, i32) {
    %c0_i32 = arith.constant 0 : i32
    %c0_i32_0 = arith.constant 0 : i32
    %c0_i32_1 = arith.constant 0 : i32
    return %c0_i32, %c0_i32_0 : i32, i32
  }
  func.func @transform_5(%arg0: i32) -> (i32, i32) {
    %c0_i32 = arith.constant 0 : i32
    %c0_i32_0 = arith.constant 0 : i32
    %c0_i32_1 = arith.constant 0 : i32
    return %c0_i32, %c0_i32_0 : i32, i32
  }
  func.func @transform_6(%arg0: i32) -> (i32, i32, i32) {
    %c0_i32 = arith.constant 0 : i32
    %c0_i32_0 = arith.constant 0 : i32
    %c0_i32_1 = arith.constant 0 : i32
    return %arg0, %c0_i32, %c0_i32_0 : i32, i32, i32
  }
}

</mosaic_0001>

<bundles_post_ra>
// kernel: residual_block.1
= control target key start
LH: loop header
LB: loop body
LE: loop exit
PB: predicated region body
PF: predicated region fallthrough
CT: control target
= control target key end

     0   :  { %s2663_s21 = smov 0   ;;  %s3598_s0 = inlined_call_operand.vmem [shape: f32[2,32,256], index: 0, kind: input, shape index: {}]   ;;  %s3599_s1 = inlined_call_operand.vmem [shape: f32[1,384], index: 1, kind: input, shape index: {}]   ;;  %s3600_s2 = inlined_call_operand.vmem [shape: bf16[32,288], index: 2, kind: input, shape index: {}]   ;;  %s3601_s3 = inlined_call_operand.vmem [shape: f32[32,1], index: 3, kind: input, shape index: {}]   ;;  %s3602_s4 = inlined_call_operand.vmem [shape: bf16[32,288], index: 4, kind: input, shape index: {}]   ;;  %s3603_s5 = inlined_call_operand.vmem [shape: f32[32,1], index: 5, kind: input, shape index: {}]   ;;  %s3604_s6 = inlined_call_operand.vmem [shape: f32[2,32,384], index: 6, kind: output, shape index: {}]  }
   0x1 LB: > { %s2400_s22 = sadd.s32 4294967295, %s2601_s21   ;;  %p2404_p0 = scmp.ge.s32.totalorder %s2601_s21, 1  ;;  %s2601_s21 = sphi %s2663_s21, %s16_s21  }
   0x2   : > { %p212_p1 = scmp.lt.s32.totalorder %s2601_s21, 3 }
   0x4   : > { %p213_p2 = pnand %p2404_p0, %p212_p1 }
   0x5   : > { %p242_p3 = scmp.lt.s32.totalorder (!%p213_p2), %s2400_s22, 1  ;;  %s2603_s27 = smov (!%p213_p2), 15   ;;  %v2615_v8 = vmov (!%p213_p2), 0   ;;  %vm452_vm0 = vcmask (!%p213_p2), 121856   ;;  %vm275_vm1 = vcmask (!%p213_p2), 138248   ;;  %vm300_vm2 = vcmask (!%p213_p2), 285848  }
   0x6   : > { %216 = sbr.rel (%p213_p2) target bundleno = 1455 (0x5af), region = 44  ;;  %s2604_s28 = smov (!%p213_p2), 1   ;;  %2578 = vset.pattern.permute.xlu1 (!%p213_p2), %v2615_v8  ;;  %2577 = vset.pattern.permute.xlu0 (!%p213_p2), %v2615_v8  ;;  %vm480_vm3 = vcmask (!%p213_p2), 269448   ;;  %vm325_vm4 = vcmask (!%p213_p2), 433448   ;;  %vm505_vm5 = vcmask (!%p213_p2), 417048   ;;  %vm350_vm6 = vcmask (!%p213_p2), 581048  }
   0x7   : > { %s2605_s29 = smov (!%p213_p2), 3   ;;  %s2606_s30 = smov (!%p213_p2), 17   ;;  %vm530_vm7 = vcmask (!%p213_p2), 564648   ;;  %vm375_vm8 = vcmask (!%p213_p2), 728648   ;;  %vm555_vm9 = vcmask (!%p213_p2), 712248   ;;  %vm400_vm10 = vcmask (!%p213_p2), 876248  }
   0x8   : > { %s2607_s7 = smov (!%p213_p2), 5   ;;  %s2608_s8 = smov (!%p213_p2), 19   ;;  %vm580_vm11 = vcmask (!%p213_p2), 859848   ;;  %vm425_vm12 = vcmask (!%p213_p2), 1023848   ;;  %vm450_vm13 = vcmask (!%p213_p2), 1048568   ;;  %v678_v47 = vlaneseq (!%p213_p2) }
   0x9   : > { %s2609_s9 = smov (!%p213_p2), 7   ;;  %s2610_s10 = smov (!%p213_p2), 21   ;;  %vm605_vm14 = vcmask (!%p213_p2), 1007448   ;;  %v253_v48 = vld [vmem:[%s3599_s1] sm:$0x7] (!%p213_p2)  ;;  %vm630_vm15 = vcmask (!%p213_p2), 1048552  }
   0xa   : > { %s2611_s11 = smov (!%p213_p2), 9   ;;  %s2612_s12 = smov (!%p213_p2), 23   ;;  %v679_v51 = vshrl.u32 (!%p213_p2), %v678_v47, 7 }
   0xb   : > { %s2613_s13 = smov (!%p213_p2), 11   ;;  %s2614_s14 = smov (!%p213_p2), 25  }
   0xc   : > { %s2616_s15 = smov (!%p213_p2), 13   ;;  %s2617_s16 = smov (!%p213_p2), 27   ;;  %v684_v52 = vsub.s32 (!%p213_p2), 1, %v679_v51 }
   0xd   : > { %s3606_s22 = smov (!%p242_p3, %s2400_s22), 1  ;;  %s2618_s17 = smov 29  }
   0xe   : > { %s2430_s23 = sshll.u32 %s3606_s22, 6  ;;  %s2619_s18 = smov 31  }
   0xf   : > { %s2677_s26 = scalar_lea.vmem %s3598_s0, %s2430_s23  ;;  %s2620_s23 = smov 109  }
  0x10   : > { %v430_v0 = vld [vmem:[%s2677_s26] sm:$0xff]  ;;  %v431_v1 = vld [vmem:[%s2677_s26 + $0x10] sm:$0xff]  ;;  %v461_v2 = vld [vmem:[%s2677_s26 + $0x18] sm:$0xff]  ;;  %s2621_s24 = smov 127   ;;  %s2622_s25 = smov 108  }
  0x11   : > { %438 = vrot.lane.b32.xlu1 %v430_v0, %s2603_s27  ;;  %263 = vrot.lane.b32.xlu0 %v430_v0, %s2604_s28  ;;  %v460_v3 = vld [vmem:[%s2677_s26 + $0x8] sm:$0xff]  ;;  %v258_v4 = vld [vmem:[%s2677_s26 + $0x30] sm:$0xff] }
  0x12   : > { %v257_v5 = vld [vmem:[%s2677_s26 + $0x20] sm:$0xff]  ;;  %v463_v6 = vld [vmem:[%s2677_s26 + $0x38] sm:$0xff]  ;;  %v462_v7 = vld [vmem:[%s2677_s26 + $0x28] sm:$0xff]  ;;  %s2623_s26 = smov 126  }
  0x15   : > { %440 = vrot.lane.b32.xlu1 %v431_v1, %s2603_s27  ;;  %265 = vrot.lane.b32.xlu0 %v431_v1, %s2604_s28 }
  0x19   : > { %290 = vrot.lane.b32.xlu1 %v431_v1, %s2605_s29  ;;  %288 = vrot.lane.b32.xlu0 %v430_v0, %s2605_s29 }
  0x1d   : > { %470 = vrot.lane.b32.xlu1 %v461_v2, %s2606_s30  ;;  %468 = vrot.lane.b32.xlu0 %v460_v3, %s2606_s30 }
  0x21   : > { %315 = vrot.lane.b32.xlu1 %v431_v1, %s2607_s7  ;;  %313 = vrot.lane.b32.xlu0 %v430_v0, %s2607_s7 }
  0x25   : > { %495 = vrot.lane.b32.xlu1 %v461_v2, %s2608_s8  ;;  %493 = vrot.lane.b32.xlu0 %v460_v3, %s2608_s8 }
  0x29   : > { %340 = vrot.lane.b32.xlu1 %v431_v1, %s2609_s9  ;;  %338 = vrot.lane.b32.xlu0 %v430_v0, %s2609_s9 }
  0x2d   : > { %520 = vrot.lane.b32.xlu1 %v461_v2, %s2610_s10  ;;  %518 = vrot.lane.b32.xlu0 %v460_v3, %s2610_s10 }
  0x31   : > { %269 = vrot.lane.b32.xlu1 %v258_v4, %s2604_s28  ;;  %267 = vrot.lane.b32.xlu0 %v257_v5, %s2604_s28  ;;  %s2625_s28 = smov 110  }
  0x35   : > { %365 = vrot.lane.b32.xlu1 %v431_v1, %s2611_s11  ;;  %363 = vrot.lane.b32.xlu0 %v430_v0, %s2611_s11 }
  0x39   : > { %444 = vrot.lane.b32.xlu1 %v258_v4, %s2603_s27  ;;  %442 = vrot.lane.b32.xlu0 %v257_v5, %s2603_s27  ;;  %s2624_s27 = smov 92  }
  0x3d   : > { %545 = vrot.lane.b32.xlu1 %v461_v2, %s2612_s12  ;;  %543 = vrot.lane.b32.xlu0 %v460_v3, %s2612_s12 }
  0x41   : > { %294 = vrot.lane.b32.xlu1 %v258_v4, %s2605_s29  ;;  %292 = vrot.lane.b32.xlu0 %v257_v5, %s2605_s29  ;;  %s2626_s29 = smov 91  }
  0x45   : > { %390 = vrot.lane.b32.xlu1 %v431_v1, %s2613_s13  ;;  %388 = vrot.lane.b32.xlu0 %v430_v0, %s2613_s13 }
  0x49   : > { %474 = vrot.lane.b32.xlu1 %v463_v6, %s2606_s30  ;;  %472 = vrot.lane.b32.xlu0 %v462_v7, %s2606_s30 }
  0x4d   : > { %570 = vrot.lane.b32.xlu1 %v461_v2, %s2614_s14  ;;  %568 = vrot.lane.b32.xlu0 %v460_v3, %s2614_s14 }
  0x51   : > { %319 = vrot.lane.b32.xlu1 %v258_v4, %s2607_s7  ;;  %317 = vrot.lane.b32.xlu0 %v257_v5, %s2607_s7 }
  0x55   : > { %415 = vrot.lane.b32.xlu1 %v431_v1, %s2616_s15  ;;  %413 = vrot.lane.b32.xlu0 %v430_v0, %s2616_s15 }
  0x59   : > { %499 = vrot.lane.b32.xlu1 %v463_v6, %s2608_s8  ;;  %497 = vrot.lane.b32.xlu0 %v462_v7, %s2608_s8 }
  0x5d   : > { %595 = vrot.lane.b32.xlu1 %v461_v2, %s2617_s16  ;;  %593 = vrot.lane.b32.xlu0 %v460_v3, %s2617_s16 }
  0x61   : > { %620 = vrot.lane.b32.xlu1 %v461_v2, %s2618_s17  ;;  %618 = vrot.lane.b32.xlu0 %v460_v3, %s2618_s17 }
  0x65   : > { %344 = vrot.lane.b32.xlu1 %v258_v4, %s2609_s9  ;;  %342 = vrot.lane.b32.xlu0 %v257_v5, %s2609_s9  ;;  %s2627_s9 = smov 90  }
  0x69   : > { %524 = vrot.lane.b32.xlu1 %v463_v6, %s2610_s10  ;;  %522 = vrot.lane.b32.xlu0 %v462_v7, %s2610_s10 }
  0x6d   : > { %650 = vrot.lane.b32.xlu1 %v461_v2, %s2619_s18  ;;  %648 = vrot.lane.b32.xlu0 %v460_v3, %s2619_s18  ;;  %v688_v2 = vsub.s32 2, %v679_v51 }
  0x71   : > { %369 = vrot.lane.b32.xlu1 %v258_v4, %s2611_s11  ;;  %367 = vrot.lane.b32.xlu0 %v257_v5, %s2611_s11 }
  0x75   : > { %549 = vrot.lane.b32.xlu1 %v463_v6, %s2612_s12  ;;  %547 = vrot.lane.b32.xlu0 %v462_v7, %s2612_s12 }
  0x79   : > { %394 = vrot.lane.b32.xlu1 %v258_v4, %s2613_s13  ;;  %392 = vrot.lane.b32.xlu0 %v257_v5, %s2613_s13  ;;  %s2543_s13 = smul.u32 96, %s3606_s22 }
  0x7d   : > { %574 = vrot.lane.b32.xlu1 %v463_v6, %s2614_s14  ;;  %572 = vrot.lane.b32.xlu0 %v462_v7, %s2614_s14 }
  0x81   : > { %419 = vrot.lane.b32.xlu1 %v258_v4, %s2616_s15  ;;  %417 = vrot.lane.b32.xlu0 %v257_v5, %s2616_s15  ;;  %v680_v5 = vsub.s32 0, %v679_v51 }
  0x83   : > { %v2737_v9 = vpop.permute.xlu1 %438  ;;  %v264_v10 = vpop.permute.xlu0 %263 }
  0x84   : > { %453 = vst.msk [vmem:[#allocation2 + $0x8] sm:$0xff] %vm452_vm0, %v2737_v9 }
  0x85   : > { %276 = vst.msk [vmem:[#allocation2] sm:$0xff] %vm275_vm1, %v264_v10  ;;  %599 = vrot.lane.b32.xlu1 %v463_v6, %s2617_s16  ;;  %597 = vrot.lane.b32.xlu0 %v462_v7, %s2617_s16 }
  0x87   : > { %v2742_v11 = vpop.permute.xlu1 %440  ;;  %v266_v12 = vpop.permute.xlu0 %265 }
  0x88   : > { %455 = vst.msk [vmem:[#allocation2 + $0x20] sm:$0xff] %vm452_vm0, %v2742_v11 }
  0x89   : > { %277 = vst.msk [vmem:[#allocation2 + $0x18] sm:$0xff] %vm275_vm1, %v266_v12  ;;  %624 = vrot.lane.b32.xlu1 %v463_v6, %s2618_s17  ;;  %622 = vrot.lane.b32.xlu0 %v462_v7, %s2618_s17 }
  0x8b   : > { %v291_v13 = vpop.permute.xlu1 %290  ;;  %v289_v14 = vpop.permute.xlu0 %288 }
  0x8c   : > { %302 = vst.msk [vmem:[#allocation2 + $0x18] sm:$0xff] %vm300_vm2, %v291_v13  ;;  %301 = vst.msk [vmem:[#allocation2] sm:$0xff] %vm300_vm2, %v289_v14 }
  0x8d   : > { %654 = vrot.lane.b32.xlu1 %v463_v6, %s2619_s18  ;;  %652 = vrot.lane.b32.xlu0 %v462_v7, %s2619_s18 }
  0x8f   : > { %v471_v15 = vpop.permute.xlu1 %470  ;;  %v469_v16 = vpop.permute.xlu0 %468 }
  0x90   : > { %482 = vst.msk [vmem:[#allocation2 + $0x20] sm:$0xff] %vm480_vm3, %v471_v15  ;;  %481 = vst.msk [vmem:[#allocation2 + $0x8] sm:$0xff] %vm480_vm3, %v469_v16 }
  0x93   : > { %v316_v17 = vpop.permute.xlu1 %315  ;;  %v314_v18 = vpop.permute.xlu0 %313 }
  0x94   : > { %327 = vst.msk [vmem:[#allocation2 + $0x18] sm:$0xff] %vm325_vm4, %v316_v17  ;;  %326 = vst.msk [vmem:[#allocation2] sm:$0xff] %vm325_vm4, %v314_v18 }
  0x97   : > { %v496_v19 = vpop.permute.xlu1 %495  ;;  %v494_v20 = vpop.permute.xlu0 %493 }
  0x98   : > { %507 = vst.msk [vmem:[#allocation2 + $0x20] sm:$0xff] %vm505_vm5, %v496_v19  ;;  %506 = vst.msk [vmem:[#allocation2 + $0x8] sm:$0xff] %vm505_vm5, %v494_v20 }
  0x9b   : > { %v341_v21 = vpop.permute.xlu1 %340  ;;  %v339_v22 = vpop.permute.xlu0 %338 }
  0x9c   : > { %352 = vst.msk [vmem:[#allocation2 + $0x18] sm:$0xff] %vm350_vm6, %v341_v21  ;;  %351 = vst.msk [vmem:[#allocation2] sm:$0xff] %vm350_vm6, %v339_v22 }
  0x9f   : > { %v521_v23 = vpop.permute.xlu1 %520  ;;  %v519_v24 = vpop.permute.xlu0 %518 }
  0xa0   : > { %532 = vst.msk [vmem:[#allocation2 + $0x20] sm:$0xff] %vm530_vm7, %v521_v23  ;;  %531 = vst.msk [vmem:[#allocation2 + $0x8] sm:$0xff] %vm530_vm7, %v519_v24 }
  0xa3   : > { %v270_v25 = vpop.permute.xlu1 %269  ;;  %v268_v26 = vpop.permute.xlu0 %267 }
  0xa4   : > { %279 = vst.msk [vmem:[#allocation2 + $0x48] sm:$0xff] %vm275_vm1, %v270_v25  ;;  %278 = vst.msk [vmem:[#allocation2 + $0x30] sm:$0xff] %vm275_vm1, %v268_v26  ;;  %vm632_vm1 = vcmask 105472  }
  0xa7   : > { %v366_v27 = vpop.permute.xlu1 %365  ;;  %v364_v28 = vpop.permute.xlu0 %363 }
  0xa8   : > { %377 = vst.msk [vmem:[#allocation2 + $0x18] sm:$0xff] %vm375_vm8, %v366_v27  ;;  %376 = vst.msk [vmem:[#allocation2] sm:$0xff] %vm375_vm8, %v364_v28 }
  0xab   : > { %v2767_v29 = vpop.permute.xlu1 %444  ;;  %v2769_v30 = vpop.permute.xlu0 %442 }
  0xac   : > { %459 = vst.msk [vmem:[#allocation2 + $0x50] sm:$0xff] %vm452_vm0, %v2767_v29  ;;  %457 = vst.msk [vmem:[#allocation2 + $0x38] sm:$0xff] %vm452_vm0, %v2769_v30  ;;  %vm254_vm0 = vcmp.ne.f32.partialorder %v253_v48, 0.0 }
  0xad   : > { %v677_v55 = vsel %vm254_vm0, 1, %v2615_v8  ;;  %vm1292_vm0 = vcmask 261120  }
  0xae   : > { %v2813_v56 = vrot.slane %v677_v55, %v684_v52  ;;  %v2833_v6 = vrot.slane %v677_v55, %v688_v2  ;;  %v2835_v10 = vrot.slane %v677_v55, %v680_v5 }
  0xaf   : > { %v546_v31 = vpop.permute.xlu1 %545  ;;  %v544_v32 = vpop.permute.xlu0 %543 }
  0xb0   : > { %557 = vst.msk [vmem:[#allocation2 + $0x20] sm:$0xff] %vm555_vm9, %v546_v31  ;;  %556 = vst.msk [vmem:[#allocation2 + $0x8] sm:$0xff] %vm555_vm9, %v544_v32 }
  0xb3   : > { %v295_v33 = vpop.permute.xlu1 %294  ;;  %v293_v34 = vpop.permute.xlu0 %292 }
  0xb4   : > { %304 = vst.msk [vmem:[#allocation2 + $0x48] sm:$0xff] %vm300_vm2, %v295_v33  ;;  %303 = vst.msk [vmem:[#allocation2 + $0x30] sm:$0xff] %vm300_vm2, %v293_v34  ;;  %vm705_vm2 = vcmask 154624  }
  0xb5   : > { %706 = vst.msk [vmem:[#allocation3] sm:$0xff] %vm705_vm2, %v2615_v8  ;;  %707 = vst.msk [vmem:[#allocation3 + $0x20] sm:$0xff] %vm705_vm2, %v2615_v8 }
  0xb7   : > { %v391_v35 = vpop.permute.xlu1 %390  ;;  %v389_v36 = vpop.permute.xlu0 %388 }
  0xb8   : > { %402 = vst.msk [vmem:[#allocation2 + $0x18] sm:$0xff] %vm400_vm10, %v391_v35  ;;  %401 = vst.msk [vmem:[#allocation2] sm:$0xff] %vm400_vm10, %v389_v36 }
  0xbb   : > { %v475_v37 = vpop.permute.xlu1 %474  ;;  %v473_v38 = vpop.permute.xlu0 %472 }
  0xbc   : > { %484 = vst.msk [vmem:[#allocation2 + $0x50] sm:$0xff] %vm480_vm3, %v475_v37  ;;  %483 = vst.msk [vmem:[#allocation2 + $0x38] sm:$0xff] %vm480_vm3, %v473_v38  ;;  %vm708_vm3 = vcmask 1047704  }
  0xbd   : > { %709 = vst.msk [vmem:[#allocation3 + $0x18] sm:$0xff] %vm708_vm3, %v2615_v8  ;;  %710 = vst.msk [vmem:[#allocation3 + $0x38] sm:$0xff] %vm708_vm3, %v2615_v8 }
  0xbf   : > { %v571_v39 = vpop.permute.xlu1 %570  ;;  %v569_v40 = vpop.permute.xlu0 %568 }
  0xc0   : > { %582 = vst.msk [vmem:[#allocation2 + $0x20] sm:$0xff] %vm580_vm11, %v571_v39  ;;  %581 = vst.msk [vmem:[#allocation2 + $0x8] sm:$0xff] %vm580_vm11, %v569_v40 }
  0xc3   : > { %v320_v41 = vpop.permute.xlu1 %319  ;;  %v318_v42 = vpop.permute.xlu0 %317 }
  0xc4   : > { %329 = vst.msk [vmem:[#allocation2 + $0x48] sm:$0xff] %vm325_vm4, %v320_v41  ;;  %328 = vst.msk [vmem:[#allocation2 + $0x30] sm:$0xff] %vm325_vm4, %v318_v42  ;;  %vm691_vm4 = vcmp.eq.s32.totalorder %v2813_v56, 1 }
  0xc7   : > { %v416_v43 = vpop.permute.xlu1 %415  ;;  %v414_v44 = vpop.permute.xlu0 %413 }
  0xc8   : > { %427 = vst.msk [vmem:[#allocation2 + $0x18] sm:$0xff] %vm425_vm12, %v416_v43  ;;  %426 = vst.msk [vmem:[#allocation2] sm:$0xff] %vm425_vm12, %v414_v44 }
  0xc9   : > { %454 = vst.msk [vmem:[#allocation2 + $0x18] sm:$0xff] %vm450_vm13, %v2742_v11  ;;  %451 = vst.msk [vmem:[#allocation2] sm:$0xff] %vm450_vm13, %v2737_v9 }
  0xcb   : > { %v500_v45 = vpop.permute.xlu1 %499  ;;  %v498_v46 = vpop.permute.xlu0 %497 }
  0xcc   : > { %509 = vst.msk [vmem:[#allocation2 + $0x50] sm:$0xff] %vm505_vm5, %v500_v45  ;;  %508 = vst.msk [vmem:[#allocation2 + $0x38] sm:$0xff] %vm505_vm5, %v498_v46  ;;  %vm660_vm5 = vcmask 253048  }
  0xcf   : > { %v596_v49 = vpop.permute.xlu1 %595  ;;  %v594_v50 = vpop.permute.xlu0 %593 }
  0xd0   : > { %607 = vst.msk [vmem:[#allocation2 + $0x20] sm:$0xff] %vm605_vm14, %v596_v49  ;;  %606 = vst.msk [vmem:[#allocation2 + $0x8] sm:$0xff] %vm605_vm14, %v594_v50  ;;  %v665_v11 = vld [vmem:[#allocation2] sm:$0xff]  ;;  %v668_v16 = vld [vmem:[#allocation2 + $0x18] sm:$0xff] }
  0xd3   : > { %v621_v53 = vpop.permute.xlu1 %620  ;;  %v619_v54 = vpop.permute.xlu0 %618 }
  0xd4   : > { %634 = vst.msk [vmem:[#allocation2 + $0x20] sm:$0xff] %vm630_vm15, %v621_v53  ;;  %631 = vst.msk [vmem:[#allocation2 + $0x8] sm:$0xff] %vm630_vm15, %v619_v54 }
  0xd5   : > { %635 = vst.msk [vmem:[#allocation2 + $0x28] sm:$0xff] %vm632_vm1, %v621_v53  ;;  %633 = vst.msk [vmem:[#allocation2 + $0x10] sm:$0xff] %vm632_vm1, %v619_v54 }
  0xd7   : > { %v345_v57 = vpop.permute.xlu1 %344  ;;  %v343_v58 = vpop.permute.xlu0 %342 }
  0xd8   : > { %354 = vst.msk [vmem:[#allocation2 + $0x48] sm:$0xff] %vm350_vm6, %v345_v57  ;;  %353 = vst.msk [vmem:[#allocation2 + $0x30] sm:$0xff] %vm350_vm6, %v343_v58  ;;  %vm692_vm6 = vcmp.eq.s32.totalorder %v2833_v6, 1 }
  0xdb   : > { %v525_v59 = vpop.permute.xlu1 %524  ;;  %v523_v60 = vpop.permute.xlu0 %522  ;;  %v666_v61 = vld [vmem:[#allocation2 + $0x8] sm:$0xff]  ;;  %v669_v62 = vld [vmem:[#allocation2 + $0x20] sm:$0xff] }
  0xdc   : > { %534 = vst.msk [vmem:[#allocation2 + $0x50] sm:$0xff] %vm530_vm7, %v525_v59  ;;  %533 = vst.msk [vmem:[#allocation2 + $0x38] sm:$0xff] %vm530_vm7, %v523_v60  ;;  %v2822_v63 = vsel %vm691_vm4, %v666_v61, 0.0  ;;  %v2826_v0 = vsel %vm691_vm4, %v669_v62, 0.0  ;;  %vm690_vm7 = vcmp.eq.s32.totalorder %v2835_v10, 1 }
  0xdd   : > { %v712_v1 = vpack.c.bf16 %v2826_v0, %v2822_v63  ;;  %v2855_v20 = vsel %vm690_vm7, %v665_v11, 0.0  ;;  %v2859_v21 = vsel %vm690_vm7, %v668_v16, 0.0 }
  0xde   : > { %v711_v24 = vpack.c.bf16 %v2859_v21, %v2855_v20 }
  0xdf   : > { %v651_v3 = vpop.permute.xlu1 %650  ;;  %725 = vrot.lane.b32.xlu1 %v712_v1, %s2608_s8  ;;  %v649_v4 = vpop.permute.xlu0 %648 }
  0xe0   : > { %662 = vst.msk [vmem:[#allocation2 + $0x28] sm:$0xff] %vm660_vm5, %v651_v3  ;;  %661 = vst.msk [vmem:[#allocation2 + $0x10] sm:$0xff] %vm660_vm5, %v649_v4  ;;  %v2581_v3 = vld [vmem:[%s3600_s2 + $0x4] ss:$12 sps:$4 sm:$0xff]  }
  0xe1   : > { %1331 = vmatprep.mubr.bf16.mxu0 %v2581_v3  ;;  %1437 = vmatprep.mubr.bf16.mxu1 %v2581_v3 }
  0xe3   : > { %v370_v7 = vpop.permute.xlu1 %369  ;;  %v368_v9 = vpop.permute.xlu0 %367 }
  0xe4   : > { %379 = vst.msk [vmem:[#allocation2 + $0x48] sm:$0xff] %vm375_vm8, %v370_v7  ;;  %378 = vst.msk [vmem:[#allocation2 + $0x30] sm:$0xff] %vm375_vm8, %v368_v9  ;;  %vm800_vm8 = vcmask 1039360  }
  0xe7   : > { %v550_v12 = vpop.permute.xlu1 %549  ;;  %v548_v13 = vpop.permute.xlu0 %547  ;;  %v667_v14 = vld [vmem:[#allocation2 + $0x10] sm:$0xff]  ;;  %v670_v15 = vld [vmem:[#allocation2 + $0x28] sm:$0xff] }
  0xe8   : > { %559 = vst.msk [vmem:[#allocation2 + $0x50] sm:$0xff] %vm555_vm9, %v550_v12  ;;  %558 = vst.msk [vmem:[#allocation2 + $0x38] sm:$0xff] %vm555_vm9, %v548_v13  ;;  %v2845_v17 = vsel %vm692_vm6, %v667_v14, 0.0  ;;  %v2849_v18 = vsel %vm692_vm6, %v670_v15, 0.0  ;;  %v1238_v13 = vld [vmem:[%s3601_s3] sm:$0xff]  ;;  %v1239_v14 = vld [vmem:[%s3601_s3 + $0x8] sm:$0xff] }
  0xe9   : > { %v713_v19 = vpack.c.bf16 %v2849_v18, %v2845_v17  ;;  %vm851_vm9 = vcmask 1031168  }
  0xeb   : > { %v395_v22 = vpop.permute.xlu1 %394  ;;  %727 = vrot.lane.b32.xlu0 %v713_v19, %s2608_s8  ;;  %v393_v23 = vpop.permute.xlu0 %392  ;;  %v1241_v19 = vld [vmem:[%s3601_s3 + $0x18] sm:$0xff] }
  0xec   : > { %404 = vst.msk [vmem:[#allocation2 + $0x48] sm:$0xff] %vm400_vm10, %v395_v22  ;;  %403 = vst.msk [vmem:[#allocation2 + $0x30] sm:$0xff] %vm400_vm10, %v393_v23  ;;  %v1240_v22 = vld [vmem:[%s3601_s3 + $0x10] sm:$0xff]  ;;  %vm902_vm10 = vcmask 900096  }
  0xef   : > { %v575_v25 = vpop.permute.xlu1 %574  ;;  %723 = vrot.lane.b32.xlu0 %v711_v24, %s2608_s8  ;;  %v573_v26 = vpop.permute.xlu0 %572 }
  0xf0   : > { %584 = vst.msk [vmem:[#allocation2 + $0x50] sm:$0xff] %vm580_vm11, %v575_v25  ;;  %583 = vst.msk [vmem:[#allocation2 + $0x38] sm:$0xff] %vm580_vm11, %v573_v26  ;;  %vm953_vm11 = vcmask 891904  }
  0xf3   : > { %v420_v27 = vpop.permute.xlu1 %419  ;;  %v418_v28 = vpop.permute.xlu0 %417 }
  0xf4   : > { %429 = vst.msk [vmem:[#allocation2 + $0x48] sm:$0xff] %vm425_vm12, %v420_v27  ;;  %428 = vst.msk [vmem:[#allocation2 + $0x30] sm:$0xff] %vm425_vm12, %v418_v28  ;;  %vm1004_vm12 = vcmask 883712  }
  0xf5   : > { %458 = vst.msk [vmem:[#allocation2 + $0x48] sm:$0xff] %vm450_vm13, %v2767_v29  ;;  %456 = vst.msk [vmem:[#allocation2 + $0x30] sm:$0xff] %vm450_vm13, %v2769_v30  ;;  %vm1055_vm13 = vcmask 752640  }
  0xf7   : > { %v600_v31 = vpop.permute.xlu1 %599  ;;  %v598_v32 = vpop.permute.xlu0 %597 }
  0xf8   : > { %609 = vst.msk [vmem:[#allocation2 + $0x50] sm:$0xff] %vm605_vm14, %v600_v31  ;;  %608 = vst.msk [vmem:[#allocation2 + $0x38] sm:$0xff] %vm605_vm14, %v598_v32  ;;  %vm1106_vm14 = vcmask 744448  }
  0xfb   : > { %v625_v33 = vpop.permute.xlu1 %624  ;;  %v623_v34 = vpop.permute.xlu0 %622 }
  0xfc   : > { %638 = vst.msk [vmem:[#allocation2 + $0x50] sm:$0xff] %vm630_vm15, %v625_v33  ;;  %636 = vst.msk [vmem:[#allocation2 + $0x38] sm:$0xff] %vm630_vm15, %v623_v34  ;;  %v671_v29 = vld [vmem:[#allocation2 + $0x30] sm:$0xff]  ;;  %v674_v35 = vld [vmem:[#allocation2 + $0x48] sm:$0xff]  ;;  %vm1157_vm15 = vcmask 736256  }
  0xfd   : > { %639 = vst.msk [vmem:[#allocation2 + $0x58] sm:$0xff] %vm632_vm1, %v625_v33  ;;  %637 = vst.msk [vmem:[#allocation2 + $0x40] sm:$0xff] %vm632_vm1, %v623_v34  ;;  %v2883_v30 = vsel %vm690_vm7, %v671_v29, 0.0  ;;  %v2887_v36 = vsel %vm690_vm7, %v674_v35, 0.0 }
  0xfe   : > { %v714_v37 = vpack.c.bf16 %v2887_v36, %v2883_v30 }
  0xff   : > { %v655_v38 = vpop.permute.xlu1 %654  ;;  %v653_v39 = vpop.permute.xlu0 %652 }
 0x100   : > { %664 = vst.msk [vmem:[#allocation2 + $0x58] sm:$0xff] %vm660_vm5, %v655_v38  ;;  %663 = vst.msk [vmem:[#allocation2 + $0x40] sm:$0xff] %vm660_vm5, %v653_v39  ;;  %729 = vrot.lane.b32.xlu1 %v714_v37, %s2608_s8 }
 0x103   : > { %v672_v40 = vld [vmem:[#allocation2 + $0x38] sm:$0xff]  ;;  %v675_v41 = vld [vmem:[#allocation2 + $0x50] sm:$0xff] }
 0x104   : > { %v2896_v42 = vsel %vm691_vm4, %v672_v40, 0.0  ;;  %v2900_v43 = vsel %vm691_vm4, %v675_v41, 0.0 }
 0x105   : > { %v715_v44 = vpack.c.bf16 %v2900_v43, %v2896_v42 }
 0x107   : > { %731 = vrot.lane.b32.xlu0 %v715_v44, %s2608_s8  ;;  %v673_v45 = vld [vmem:[#allocation2 + $0x40] sm:$0xff]  ;;  %v676_v46 = vld [vmem:[#allocation2 + $0x58] sm:$0xff] }
 0x108   : > { %v2907_v47 = vsel %vm692_vm6, %v673_v45, 0.0  ;;  %v2911_v48 = vsel %vm692_vm6, %v676_v46, 0.0 }
 0x109   : > { %v716_v49 = vpack.c.bf16 %v2911_v48, %v2907_v47 }
 0x10b   : > { %733 = vrot.lane.b32.xlu1 %v716_v49, %s2608_s8 }
 0x151   : > { %v726_v51 = vpop.permute.xlu1 %725 }
 0x15d   : > { %v728_v50 = vpop.permute.xlu0 %727 }
 0x15e   : > { %751 = vst.msk [vmem:[#allocation3 + $0x18] sm:$0xff] %vm705_vm2, %v728_v50  ;;  %v2991_v1 = vsel %vm705_vm2, %v726_v51, %v728_v50 }
 0x161   : > { %v724_v52 = vpop.permute.xlu0 %723 }
 0x162   : > { %v2918_v53 = vsel %vm705_vm2, %v724_v52, %v726_v51  ;;  %748 = vst.msk [vmem:[#allocation3] sm:$0xff] %vm708_vm3, %v724_v52 }
 0x163   : > { %1299 = vmatprep.subr.bf16.mxu0 %v2918_v53 }
 0x165   : > { %v2922_v54 = vld [vmem:[#allocation3 + $0x18] sm:$0xff] }
 0x166   : > { %943 = vrot.lane.b32.xlu1 %v2922_v54, %s2620_s23  ;;  %790 = vrot.lane.b32.xlu0 %v2922_v54, %s2621_s24 }
 0x169   : > { %v2928_v55 = vld [vmem:[#allocation3] sm:$0xff] }
 0x16a   : > { %1300 = vmatpush1.bf16.msra.mxu0 %v2928_v55 }
 0x172   : > { %v730_v57 = vpop.permute.xlu1 %729 }
 0x173   : > { %752 = vst.msk [vmem:[#allocation3 + $0x20] sm:$0xff] %vm708_vm3, %v730_v57 }
 0x179   : > { %v732_v58 = vpop.permute.xlu0 %731 }
 0x17a   : > { %v2933_v59 = vsel %vm705_vm2, %v730_v57, %v732_v58  ;;  %v2935_v60 = vld [vmem:[#allocation3 + $0x20] sm:$0xff] }
 0x17b   : > { %1301 = vmatprep.subr.bf16.mxu0 %v2933_v59 }
 0x17c   : > { %1302 = vmatpush1.bf16.msra.mxu0 %v2935_v60 }
 0x17d   : > { %v734_v61 = vpop.permute.xlu1 %733 }
 0x17e   : > { %755 = vst.msk [vmem:[#allocation3 + $0x38] sm:$0xff] %vm705_vm2, %v734_v61  ;;  %v2998_v2 = vsel %vm705_vm2, %v732_v58, %v734_v61 }
 0x185   : > { %v2940_v62 = vld [vmem:[#allocation3 + $0x38] sm:$0xff] }
 0x186   : > { %951 = vrot.lane.b32.xlu1 %v2940_v62, %s2620_s23  ;;  %1002 = vrot.lane.b32.xlu0 %v2940_v62, %s2622_s25 }
 0x18a   : > { %994 = vrot.lane.b32.xlu1 %v2922_v54, %s2622_s25  ;;  %841 = vrot.lane.b32.xlu0 %v2922_v54, %s2623_s26 }
 0x18e   : > { %798 = vrot.lane.b32.xlu1 %v2940_v62, %s2621_s24  ;;  %1053 = vrot.lane.b32.xlu0 %v2940_v62, %s2624_s27 }
 0x192   : > { %1045 = vrot.lane.b32.xlu1 %v2922_v54, %s2624_s27  ;;  %892 = vrot.lane.b32.xlu0 %v2922_v54, %s2625_s28 }
 0x196   : > { %849 = vrot.lane.b32.xlu1 %v2940_v62, %s2623_s26  ;;  %784 = vrot.lane.b32.xlu0 %v2928_v55, %s2621_s24 }
 0x19a   : > { %1096 = vrot.lane.b32.xlu1 %v2922_v54, %s2626_s29  ;;  %835 = vrot.lane.b32.xlu0 %v2928_v55, %s2623_s26 }
 0x19e   : > { %792 = vrot.lane.b32.xlu1 %v2935_v60, %s2621_s24  ;;  %886 = vrot.lane.b32.xlu0 %v2928_v55, %s2625_s28 }
 0x1a2   : > { %843 = vrot.lane.b32.xlu1 %v2935_v60, %s2623_s26  ;;  %937 = vrot.lane.b32.xlu0 %v2928_v55, %s2620_s23 }
 0x1a6   : > { %894 = vrot.lane.b32.xlu1 %v2935_v60, %s2625_s28  ;;  %945 = vrot.lane.b32.xlu0 %v2935_v60, %s2620_s23 }
 0x1aa   : > { %996 = vrot.lane.b32.xlu1 %v2935_v60, %s2622_s25  ;;  %988 = vrot.lane.b32.xlu0 %v2928_v55, %s2622_s25 }
 0x1ae   : > { %1047 = vrot.lane.b32.xlu1 %v2935_v60, %s2624_s27  ;;  %1039 = vrot.lane.b32.xlu0 %v2928_v55, %s2624_s27 }
 0x1b2   : > { %1098 = vrot.lane.b32.xlu1 %v2935_v60, %s2626_s29  ;;  %1090 = vrot.lane.b32.xlu0 %v2928_v55, %s2626_s29 }
 0x1b6   : > { %788 = vrot.lane.b32.xlu1 %v2991_v1, %s2621_s24  ;;  %786 = vrot.lane.b32.xlu0 %v2918_v53, %s2621_s24 }
 0x1ba   : > { %796 = vrot.lane.b32.xlu0 %v2998_v2, %s2621_s24  ;;  %794 = vrot.lane.b32.xlu1 %v2933_v59, %s2621_s24 }
 0x1be   : > { %837 = vrot.lane.b32.xlu0 %v2918_v53, %s2623_s26  ;;  %839 = vrot.lane.b32.xlu1 %v2991_v1, %s2623_s26 }
 0x1c2   : > { %847 = vrot.lane.b32.xlu0 %v2998_v2, %s2623_s26  ;;  %845 = vrot.lane.b32.xlu1 %v2933_v59, %s2623_s26 }
 0x1c6   : > { %888 = vrot.lane.b32.xlu0 %v2918_v53, %s2625_s28  ;;  %890 = vrot.lane.b32.xlu1 %v2991_v1, %s2625_s28 }
 0x1ca   : > { %898 = vrot.lane.b32.xlu0 %v2998_v2, %s2625_s28  ;;  %896 = vrot.lane.b32.xlu1 %v2933_v59, %s2625_s28 }
 0x1ce   : > { %939 = vrot.lane.b32.xlu0 %v2918_v53, %s2620_s23  ;;  %941 = vrot.lane.b32.xlu1 %v2991_v1, %s2620_s23 }
 0x1d2   : > { %947 = vrot.lane.b32.xlu0 %v2933_v59, %s2620_s23  ;;  %949 = vrot.lane.b32.xlu1 %v2998_v2, %s2620_s23 }
 0x1d6   : > { %990 = vrot.lane.b32.xlu0 %v2918_v53, %s2622_s25  ;;  %992 = vrot.lane.b32.xlu1 %v2991_v1, %s2622_s25 }
 0x1d8   : > { %v3063_v4 = vpop.permute.xlu1 %943  ;;  %v3065_v5 = vpop.permute.xlu0 %790 }
 0x1da   : > { %998 = vrot.lane.b32.xlu0 %v2933_v59, %s2622_s25  ;;  %1000 = vrot.lane.b32.xlu1 %v2998_v2, %s2622_s25 }
 0x1de   : > { %1043 = vrot.lane.b32.xlu0 %v2991_v1, %s2624_s27  ;;  %1041 = vrot.lane.b32.xlu1 %v2918_v53, %s2624_s27 }
 0x1e2   : > { %1049 = vrot.lane.b32.xlu0 %v2933_v59, %s2624_s27  ;;  %1051 = vrot.lane.b32.xlu1 %v2998_v2, %s2624_s27 }
 0x1e6   : > { %1094 = vrot.lane.b32.xlu0 %v2991_v1, %s2626_s29  ;;  %1092 = vrot.lane.b32.xlu1 %v2918_v53, %s2626_s29 }
 0x1ea   : > { %1100 = vrot.lane.b32.xlu0 %v2933_v59, %s2626_s29  ;;  %1102 = vrot.lane.b32.xlu1 %v2998_v2, %s2626_s29 }
 0x1ee   : > { %1104 = vrot.lane.b32.xlu0 %v2940_v62, %s2626_s29  ;;  %900 = vrot.lane.b32.xlu1 %v2940_v62, %s2625_s28 }
 0x1f2   : > { %1141 = vrot.lane.b32.xlu0 %v2928_v55, %s2627_s9  ;;  %1147 = vrot.lane.b32.xlu1 %v2922_v54, %s2627_s9 }
 0x1f6   : > { %1143 = vrot.lane.b32.xlu0 %v2918_v53, %s2627_s9  ;;  %1145 = vrot.lane.b32.xlu1 %v2991_v1, %s2627_s9 }
 0x1f8   : > { %v3071_v7 = vpop.permute.xlu1 %951  ;;  %v3073_v9 = vpop.permute.xlu0 %1002 }
 0x1fa   : > { %1151 = vrot.lane.b32.xlu0 %v2933_v59, %s2627_s9  ;;  %1153 = vrot.lane.b32.xlu1 %v2998_v2, %s2627_s9 }
 0x1fc   : > { %v3079_v11 = vpop.permute.xlu1 %994  ;;  %v3081_v12 = vpop.permute.xlu0 %841 }
 0x1fe   : > { %1149 = vrot.lane.b32.xlu0 %v2935_v60, %s2627_s9  ;;  %1155 = vrot.lane.b32.xlu1 %v2940_v62, %s2627_s9 }
 0x200   : > { %v3093_v15 = vpop.permute.xlu1 %798  ;;  %v3095_v16 = vpop.permute.xlu0 %1053 }
 0x202   : > { %1244 = vperm.xlu0 %2577, %v1238_v13   ;;  %1249 = vperm.xlu1 %2578, %v1239_v14  }
 0x204   : > { %v3103_v23 = vpop.permute.xlu1 %1045  ;;  %v3105_v24 = vpop.permute.xlu0 %892 }
 0x206   : > { %1259 = vperm.xlu0 %2577, %v1241_v19   ;;  %1254 = vperm.xlu1 %2578, %v1240_v22  }
 0x208   : > { %v3107_v25 = vpop.permute.xlu1 %849  ;;  %v785_v26 = vpop.permute.xlu0 %784 }
 0x20c   : > { %v3109_v27 = vpop.permute.xlu1 %1096  ;;  %v836_v28 = vpop.permute.xlu0 %835 }
 0x210   : > { %v793_v31 = vpop.permute.xlu1 %792  ;;  %v887_v32 = vpop.permute.xlu0 %886 }
 0x214   : > { %v844_v33 = vpop.permute.xlu1 %843  ;;  %v938_v34 = vpop.permute.xlu0 %937 }
 0x218   : > { %v895_v29 = vpop.permute.xlu1 %894  ;;  %v946_v35 = vpop.permute.xlu0 %945 }
 0x21c   : > { %v3111_v37 = vpop.permute.xlu1 %996  ;;  %v3113_v38 = vpop.permute.xlu0 %988 }
 0x220   : > { %v3115_v39 = vpop.permute.xlu1 %1047  ;;  %v3117_v40 = vpop.permute.xlu0 %1039 }
 0x224   : > { %v3119_v41 = vpop.permute.xlu1 %1098  ;;  %v3121_v44 = vpop.permute.xlu0 %1090 }
 0x228   : > { %v3123_v45 = vpop.permute.xlu1 %788  ;;  %v787_v46 = vpop.permute.xlu0 %786 }
 0x229   : > { %v802_v49 = vsel %vm800_vm8, %v787_v46, %v3123_v45  ;;  %v801_v50 = vsel %vm800_vm8, %v785_v26, %v787_v46 }
 0x22a   : > { %1303 = vmatprep.subr.bf16.mxu0 %v802_v49 }
 0x22b   : > { %1304 = vmatpush1.bf16.msra.mxu0 %v801_v50 }
 0x22c   : > { %v795_v51 = vpop.permute.xlu1 %794  ;;  %v3128_v52 = vpop.permute.xlu0 %796 }
 0x22d   : > { %v805_v53 = vsel %vm800_vm8, %v795_v51, %v3128_v52  ;;  %v804_v54 = vsel %vm800_vm8, %v793_v31, %v795_v51 }
 0x22e   : > { %1305 = vmatprep.subr.bf16.mxu0 %v805_v53 }
 0x22f   : > { %1306 = vmatpush1.bf16.msra.mxu0 %v804_v54 }
 0x230   : > { %v3133_v55 = vpop.permute.xlu1 %839  ;;  %v838_v57 = vpop.permute.xlu0 %837 }
 0x231   : > { %v853_v58 = vsel %vm851_vm9, %v838_v57, %v3133_v55  ;;  %v852_v59 = vsel %vm851_vm9, %v836_v28, %v838_v57 }
 0x232   : > { %1307 = vmatprep.subr.bf16.mxu0 %v853_v58 }
 0x233   : > { %1308 = vmatpush1.bf16.msra.mxu0 %v852_v59 }
 0x234   : > { %v846_v60 = vpop.permute.xlu1 %845  ;;  %v3138_v61 = vpop.permute.xlu0 %847 }
 0x235   : > { %v856_v62 = vsel %vm851_vm9, %v846_v60, %v3138_v61  ;;  %v855_v3 = vsel %vm851_vm9, %v844_v33, %v846_v60 }
 0x236   : > { %1309 = vmatprep.subr.bf16.mxu0 %v856_v62 }
 0x237   : > { %1310 = vmatpush1.bf16.msra.mxu0 %v855_v3 }
 0x238   : > { %v3143_v13 = vpop.permute.xlu1 %890  ;;  %v889_v14 = vpop.permute.xlu0 %888 }
 0x239   : > { %v904_v19 = vsel %vm902_vm10, %v889_v14, %v3143_v13  ;;  %v903_v22 = vsel %vm902_vm10, %v887_v32, %v889_v14 }
 0x23a   : > { %1311 = vmatprep.subr.bf16.mxu0 %v904_v19 }
 0x23b   : > { %1312 = vmatpush1.bf16.msra.mxu0 %v903_v22 }
 0x23c   : > { %v897_v26 = vpop.permute.xlu1 %896  ;;  %v3148_v28 = vpop.permute.xlu0 %898 }
 0x23d   : > { %v907_v31 = vsel %vm902_vm10, %v897_v26, %v3148_v28  ;;  %v906_v33 = vsel %vm902_vm10, %v895_v29, %v897_v26 }
 0x23e   : > { %1313 = vmatprep.subr.bf16.mxu0 %v907_v31 }
 0x23f   : > { %1314 = vmatpush1.bf16.msra.mxu0 %v906_v33 }
 0x240   : > { %v942_v46 = vpop.permute.xlu1 %941  ;;  %v940_v49 = vpop.permute.xlu0 %939 }
 0x241   : > { %v955_v50 = vsel %vm953_vm11, %v940_v49, %v942_v46  ;;  %v956_v32 = vsel %vm953_vm11, %v942_v46, %v3063_v4  ;;  %v954_v51 = vsel %vm953_vm11, %v938_v34, %v940_v49 }
 0x242   : > { %1315 = vmatprep.subr.bf16.mxu0 %v955_v50  ;;  %2431 = vmatprep.subr.bf16.mxu1 %v956_v32 }
 0x243   : > { %1316 = vmatpush1.bf16.msra.mxu0 %v954_v51  ;;  %2432 = vmatpush3.bf16.msra.mxu1 %v2991_v1 }
 0x244   : > { %v950_v53 = vpop.permute.xlu1 %949  ;;  %v948_v54 = vpop.permute.xlu0 %947 }
 0x245   : > { %v958_v29 = vsel %vm953_vm11, %v948_v54, %v950_v53  ;;  %v959_v57 = vsel %vm953_vm11, %v950_v53, %v3071_v7  ;;  %v957_v58 = vsel %vm953_vm11, %v946_v35, %v948_v54  ;;  %v803_v7 = vsel %vm800_vm8, %v3123_v45, %v3065_v5 }
 0x246   : > { %1317 = vmatprep.subr.bf16.mxu0 %v958_v29  ;;  %2433 = vmatprep.subr.bf16.mxu1 %v959_v57  ;;  %v2584_v29 = vld [vmem:[%s3600_s2 + $0x18] ss:$12 sps:$4 sm:$0xff]  }
 0x247   : > { %1318 = vmatpush1.bf16.msra.mxu0 %v957_v58  ;;  %2434 = vmatpush3.bf16.msra.mxu1 %v2998_v2 }
 0x248   : > { %v993_v4 = vpop.permute.xlu1 %992  ;;  %v991_v34 = vpop.permute.xlu0 %990 }
 0x249   : > { %v1006_v59 = vsel %vm1004_vm12, %v991_v34, %v993_v4  ;;  %v1007_v1 = vsel %vm1004_vm12, %v993_v4, %v3079_v11  ;;  %v1005_v60 = vsel %vm1004_vm12, %v3113_v38, %v991_v34  ;;  %v806_v38 = vsel %vm800_vm8, %v3128_v52, %v3093_v15  ;;  %v2585_v4 = vld [vmem:[%s3600_s2 + $0x8] ss:$12 sps:$4 sm:$0xff]  }
 0x24a   : > { %1319 = vmatprep.subr.bf16.mxu0 %v1006_v59  ;;  %2435 = vmatprep.subr.bf16.mxu1 %v1007_v1 }
 0x24b   : > { %1320 = vmatpush1.bf16.msra.mxu0 %v1005_v60  ;;  %2436 = vmatpush3.bf16.msra.mxu1 %v803_v7 }
 0x24c   : > { %v1001_v35 = vpop.permute.xlu1 %1000  ;;  %v999_v2 = vpop.permute.xlu0 %998 }
 0x24d   : > { %v1009_v62 = vsel %vm1004_vm12, %v999_v2, %v1001_v35  ;;  %v1010_v3 = vsel %vm1004_vm12, %v1001_v35, %v3073_v9  ;;  %v1008_v11 = vsel %vm1004_vm12, %v3111_v37, %v999_v2  ;;  %v854_v37 = vsel %vm851_vm9, %v3133_v55, %v3081_v12 }
 0x24e   : > { %1321 = vmatprep.subr.bf16.mxu0 %v1009_v62  ;;  %2437 = vmatprep.subr.bf16.mxu1 %v1010_v3  ;;  %v2586_v62 = vld [vmem:[%s3600_s2 + $0x20] ss:$12 sps:$4 sm:$0xff]  }
 0x24f   : > { %1322 = vmatpush1.bf16.msra.mxu0 %v1008_v11  ;;  %2438 = vmatpush3.bf16.msra.mxu1 %v806_v38 }
 0x250   : > { %v1042_v5 = vpop.permute.xlu1 %1041  ;;  %v1044_v45 = vpop.permute.xlu0 %1043 }
 0x251   : > { %v1057_v14 = vsel %vm1055_vm13, %v1042_v5, %v1044_v45  ;;  %v1058_v19 = vsel %vm1055_vm13, %v1044_v45, %v3103_v23  ;;  %v1056_v9 = vsel %vm1055_vm13, %v3117_v40, %v1042_v5  ;;  %v857_v40 = vsel %vm851_vm9, %v3138_v61, %v3107_v25 }
 0x252   : > { %1323 = vmatprep.subr.bf16.mxu0 %v1057_v14  ;;  %2439 = vmatprep.subr.bf16.mxu1 %v1058_v19 }
 0x253   : > { %1324 = vmatpush1.bf16.msra.mxu0 %v1056_v9  ;;  %2440 = vmatpush3.bf16.msra.mxu1 %v854_v37 }
 0x254   : > { %v1052_v15 = vpop.permute.xlu1 %1051  ;;  %v1050_v52 = vpop.permute.xlu0 %1049 }
 0x255   : > { %v1060_v22 = vsel %vm1055_vm13, %v1050_v52, %v1052_v15  ;;  %v1061_v26 = vsel %vm1055_vm13, %v1052_v15, %v3095_v16  ;;  %v1059_v23 = vsel %vm1055_vm13, %v3115_v39, %v1050_v52  ;;  %v905_v39 = vsel %vm902_vm10, %v3143_v13, %v3105_v24 }
 0x256   : > { %1325 = vmatprep.subr.bf16.mxu0 %v1060_v22  ;;  %2441 = vmatprep.subr.bf16.mxu1 %v1061_v26 }
 0x257   : > { %1326 = vmatpush1.bf16.msra.mxu0 %v1059_v23  ;;  %2442 = vmatpush3.bf16.msra.mxu1 %v857_v40 }
 0x258   : > { %v1093_v12 = vpop.permute.xlu1 %1092  ;;  %v1095_v55 = vpop.permute.xlu0 %1094 }
 0x259   : > { %v1108_v31 = vsel %vm1106_vm14, %v1093_v12, %v1095_v55  ;;  %v1109_v33 = vsel %vm1106_vm14, %v1095_v55, %v3109_v27  ;;  %v1107_v16 = vsel %vm1106_vm14, %v3121_v44, %v1093_v12  ;;  %v2579_v27 = vld [vmem:[%s3600_s2] ss:$12 sps:$4 sm:$0xff]   ;;  %v2582_v44 = vld [vmem:[%s3600_s2 + $0x1c] ss:$12 sps:$4 sm:$0xff]  }
 0x25a   : > { %1327 = vmatprep.subr.bf16.mxu0 %v1108_v31  ;;  %2443 = vmatprep.subr.bf16.mxu1 %v1109_v33 }
 0x25b   : > { %1328 = vmatpush1.bf16.msra.mxu0 %v1107_v16  ;;  %2444 = vmatpush3.bf16.msra.mxu1 %v905_v39 }
 0x25c   : > { %v1103_v25 = vpop.permute.xlu1 %1102  ;;  %v1101_v61 = vpop.permute.xlu0 %1100 }
 0x25d   : > { %v1111_v46 = vsel %vm1106_vm14, %v1101_v61, %v1103_v25  ;;  %v1110_v49 = vsel %vm1106_vm14, %v3119_v41, %v1101_v61 }
 0x25e   : > { %1329 = vmatprep.subr.bf16.mxu0 %v1111_v46 }
 0x25f   : > { %1330 = vmatpush1.bf16.msra.mxu0 %v1110_v49 }
 0x260   : > { %v901_v24 = vpop.permute.xlu1 %900  ;;  %v1105_v13 = vpop.permute.xlu0 %1104 }
 0x261   : > { %v1112_v50 = vsel %vm1106_vm14, %v1103_v25, %v1105_v13  ;;  %v908_v32 = vsel %vm902_vm10, %v3148_v28, %v901_v24 }
 0x262   : > { %2445 = vmatprep.subr.bf16.mxu1 %v1112_v50  ;;  %1332 = vmatmul.mubr.bf16.vlgmr.msra.gmra.mrb[0].mxu0 %v2579_v27 }
 0x263   : > { %2446 = vmatpush3.bf16.msra.mxu1 %v908_v32  ;;  %1341 = vmatprep.mubr.bf16.mxu0 %v2582_v44 }
 0x264   : > { %v1148_v41 = vpop.permute.xlu1 %1147  ;;  %v1142_v51 = vpop.permute.xlu0 %1141 }
 0x266   : > { %1438 = vmatmul.mubr.bf16.vlgmr.msra.gmra.mrb[0].mxu1 %v2579_v27 }
 0x267   : > { %1445 = vmatprep.mubr.bf16.mxu1 %v2582_v44 }
 0x268   : > { %v1146_v53 = vpop.permute.xlu1 %1145  ;;  %v1144_v54 = vpop.permute.xlu0 %1143 }
 0x269   : > { %v1158_v57 = vsel %vm1157_vm15, %v1142_v51, %v1144_v54  ;;  %v1159_v58 = vsel %vm1157_vm15, %v1144_v54, %v1146_v53  ;;  %v1160_v28 = vsel %vm1157_vm15, %v1146_v53, %v1148_v41 }
 0x26a   : > { %1352 = vmatprep.subr.bf16.mxu0 %v1159_v58  ;;  %2495 = vmatprep.subr.bf16.mxu1 %v1160_v28 }
 0x26b   : > { %1353 = vmatpush1.bf16.msra.mxu0 %v1158_v57  ;;  %2496 = vmatpush3.bf16.msra.mxu1 %v1160_v28 }
 0x26c   : > { %v1154_v34 = vpop.permute.xlu1 %1153  ;;  %v1152_v59 = vpop.permute.xlu0 %1151  ;;  %1342 = vmatmul.mubr.bf16.gmra.mrb[4].mxu0 %v2584_v29 }
 0x26d   : > { %v1162_v1 = vsel %vm1157_vm15, %v1152_v59, %v1154_v34  ;;  %1384 = vmatprep.mubr.bf16.mxu0 %v2615_v8 }
 0x26e   : > { %1354 = vmatprep.subr.bf16.mxu0 %v1162_v1  ;;  %1446 = vmatmul.mubr.bf16.gmra.mrb[4].mxu1 %v2584_v29 }
 0x26f   : > { %2499 = vmatprep.mubr.msk.bf16.mxu1 %vm1292_vm0, %v2585_v4 }
 0x270   : > { %v1156_v60 = vpop.permute.xlu1 %1155  ;;  %v1150_v7 = vpop.permute.xlu0 %1149 }
 0x271   : > { %v1161_v35 = vsel %vm1157_vm15, %v1150_v7, %v1152_v59  ;;  %v1163_v2 = vsel %vm1157_vm15, %v1154_v34, %v1156_v60 }
 0x272   : > { %1355 = vmatpush1.bf16.msra.mxu0 %v1161_v35  ;;  %2497 = vmatprep.subr.bf16.mxu1 %v1163_v2 }
 0x273   : > { %2498 = vmatpush3.bf16.msra.mxu1 %v1163_v2 }
 0x275   : > { %2414 = vmatmul.mubr.msk.bf16.vlgmr.msra.gmra.mrb[0].mxu0 %vm1292_vm0, %v2585_v4 }
 0x276   : > { %2500 = vmatmul.mubr.msk.bf16.vlgmr.msra.gmra.mrb[8].mxu1 %vm1292_vm0, %v2586_v62  ;;  %1394 = vmatprep.mubr.bf16.mxu0 %v2615_v8 }
 0x27d   : > { %2415 = vmatmul.mubr.msk.bf16.gmra.mrb[4].mxu0 %vm1292_vm0, %v2586_v62 }
 0x281   : > { %v1250_v19 = vpop.permute.xlu1 %1249  ;;  %v1245_v37 = vpop.permute.xlu0 %1244 }
 0x285   : > { %v1255_v26 = vpop.permute.xlu1 %1254  ;;  %v1260_v12 = vpop.permute.xlu0 %1259 }
 0x339   : > { %v2447_v3 = vpop.f32.mrb[0].mxu1 }
 0x33a   : > { %v2448_v11 = vpop.f32.mrb[1].mxu1 }
 0x33b   : > { %v2449_v38 = vadd.f32 %v2448_v11, %v2447_v3  ;;  %v2450_v5 = vpop.f32.mrb[2].mxu1 }
 0x33c   : > { %v2451_v45 = vpop.f32.mrb[3].mxu1 }
 0x33d   : > { %v2452_v14 = vadd.f32 %v2451_v45, %v2450_v5  ;;  %v1440_v61 = vadd.f32 %v2449_v38, %v1245_v37 }
 0x33f   : > { %v1443_v51 = vadd.f32 %v2452_v14, %v1250_v19 }
 0x341   : > { %v2453_v9 = vpop.f32.mrb[4].mxu1 }
 0x342   : > { %v2454_v15 = vpop.f32.mrb[5].mxu1 }
 0x343   : > { %v2455_v52 = vadd.f32 %v2454_v15, %v2453_v9  ;;  %v2456_v22 = vpop.f32.mrb[6].mxu1 }
 0x344   : > { %v2457_v23 = vpop.f32.mrb[7].mxu1 }
 0x345   : > { %v2458_v40 = vadd.f32 %v2457_v23, %v2456_v22  ;;  %v1448_v55 = vadd.f32 %v2455_v52, %v1255_v26 }
 0x347   : > { %v1451_v33 = vadd.f32 %v2458_v40, %v1260_v12 }
 0x348   : > { %v1386_v31 = vpop.f32.mrb[0].mxu0 }
 0x349   : > { %v2511_v16 = vadd.f32 %v1386_v31, %v1245_v37  ;;  %v1388_v39 = vpop.f32.mrb[1].mxu0  ;;  %v2501_v25 = vpop.f32.mrb[8].mxu1 }
 0x34a   : > { %v2512_v46 = vadd.f32 %v1388_v39, %v1245_v37  ;;  %v1390_v49 = vpop.f32.mrb[2].mxu0  ;;  %v1488_v27 = vpop.f32.mrb[9].mxu1  ;;  %v1497_v44 = vadd.f32 %v2501_v25, %v1448_v55 }
 0x34b   : > { %v1503_v24 = vmax.f32 %v2511_v16, 0.0  ;;  %v2513_v13 = vadd.f32 %v1390_v49, %v1250_v19  ;;  %v1489_v50 = vadd.f32 %v1488_v27, %v1440_v61  ;;  %v1392_v32 = vpop.f32.mrb[3].mxu0  ;;  %v2502_v41 = vpop.f32.mrb[10].mxu1 }
 0x34c   : > { %v1504_v53 = vmax.f32 %v2512_v46, 0.0  ;;  %v2514_v54 = vadd.f32 %v1392_v32, %v1250_v19  ;;  %v1491_v29 = vpop.f32.mrb[11].mxu1  ;;  %v1511_v57 = vmax.f32 %v1497_v44, 0.0  ;;  %v1500_v58 = vadd.f32 %v2502_v41, %v1451_v33 }
 0x34d   : > { %v1506_v28 = vmax.f32 %v2513_v13, 0.0  ;;  %v1505_v4 = vmax.f32 %v1489_v50, 0.0  ;;  %v1492_v34 = vadd.f32 %v1491_v29, %v1443_v51  ;;  %v1515_v7 = vsel %vm690_vm7, %v1503_v24, 0.0 }
 0x34e   : > { %v1507_v59 = vmax.f32 %v2514_v54, 0.0  ;;  %v1523_v1 = vsel %vm692_vm6, %v1511_v57, 0.0  ;;  %v1514_v60 = vmax.f32 %v1500_v58, 0.0  ;;  %v1516_v35 = vsel %vm691_vm4, %v1504_v53, 0.0  ;;  %v2589_v58 = vld [vmem:[%s3602_s4 + $0x4] ss:$12 sps:$4 sm:$0xff]  }
 0x34f   : > { %v1518_v2 = vsel %vm690_vm7, %v1506_v28, 0.0  ;;  %v1508_v62 = vmax.f32 %v1492_v34, 0.0  ;;  %v1517_v11 = vsel %vm692_vm6, %v1505_v4, 0.0  ;;  %2137 = vmatprep.mubr.bf16.mxu1 %v2589_v58  ;;  %2243 = vmatprep.mubr.bf16.mxu0 %v2589_v58 }
 0x350   : > { %v1527_v3 = vpack.c.bf16 %v1518_v2, %v1515_v7  ;;  %v1519_v38 = vsel %vm691_vm4, %v1507_v59, 0.0  ;;  %v1526_v5 = vsel %vm692_vm6, %v1514_v60, 0.0  ;;  %v1396_v45 = vpop.f32.mrb[4].mxu0  ;;  %v2046_v60 = vld [vmem:[%s3603_s5 + $0x8] sm:$0xff]  ;;  %v2048_v2 = vld [vmem:[%s3603_s5 + $0x18] sm:$0xff] }
 0x351   : > { %v1528_v14 = vpack.c.bf16 %v1519_v38, %v1516_v35  ;;  %v1520_v19 = vsel %vm692_vm6, %v1508_v62, 0.0  ;;  %v2515_v9 = vadd.f32 %v1396_v45, %v1255_v26  ;;  %v1398_v37 = vpop.f32.mrb[5].mxu0  ;;  %v1532_v15 = vpack.c.bf16 %v1526_v5, %v1523_v1  ;;  %v2045_v5 = vld [vmem:[%s3603_s5] sm:$0xff] }
 0x352   : > { %v1529_v52 = vpack.c.bf16 %v1520_v19, %v1517_v11  ;;  %v2516_v22 = vadd.f32 %v1398_v37, %v1255_v26  ;;  %v1400_v23 = vpop.f32.mrb[6].mxu0 }
 0x353   : > { %v1509_v40 = vmax.f32 %v2515_v9, 0.0  ;;  %v2517_v55 = vadd.f32 %v1400_v23, %v1260_v12  ;;  %v1402_v31 = vpop.f32.mrb[7].mxu0  ;;  %1541 = vrot.lane.b32.xlu0 %v1528_v14, %s2608_s8  ;;  %v2047_v9 = vld [vmem:[%s3603_s5 + $0x10] sm:$0xff] }
 0x354   : > { %v1510_v33 = vmax.f32 %v2516_v22, 0.0  ;;  %v2518_v16 = vadd.f32 %v1402_v31, %v1260_v12  ;;  %1543 = vrot.lane.b32.xlu1 %v1529_v52, %s2608_s8 }
 0x355   : > { %v1512_v39 = vmax.f32 %v2517_v55, 0.0  ;;  %v1521_v6 = vsel %vm690_vm7, %v1509_v40, 0.0 }
 0x356   : > { %v1513_v25 = vmax.f32 %v2518_v16, 0.0  ;;  %v1522_v26 = vsel %vm691_vm4, %v1510_v33, 0.0 }
 0x357   : > { %v1524_v61 = vsel %vm690_vm7, %v1512_v39, 0.0 }
 0x358   : > { %v1530_v46 = vpack.c.bf16 %v1524_v61, %v1521_v6  ;;  %v1525_v49 = vsel %vm691_vm4, %v1513_v25, 0.0  ;;  %1539 = vrot.lane.b32.xlu1 %v1527_v3, %s2608_s8 }
 0x359   : > { %v1531_v12 = vpack.c.bf16 %v1525_v49, %v1522_v26 }
 0x35a   : > { %1545 = vrot.lane.b32.xlu0 %v1530_v46, %s2608_s8 }
 0x35c   : > { %1547 = vrot.lane.b32.xlu1 %v1531_v12, %s2608_s8 }
 0x35e   : > { %1549 = vrot.lane.b32.xlu0 %v1532_v15, %s2608_s8 }
 0x3c5   : > { %v1542_v27 = vpop.permute.xlu0 %1541 }
 0x3c6   : > { %v1544_v44 = vpop.permute.xlu1 %1543 }
 0x3c7   : > { %v3267_v10 = vsel %vm705_vm2, %v1542_v27, %v1544_v44  ;;  %1566 = vst.msk [vmem:[#allocation3 + $0x18] sm:$0xff] %vm705_vm2, %v1544_v44 }
 0x3ca   : > { %v1540_v24 = vpop.permute.xlu1 %1539 }
 0x3cb   : > { %v3271_v56 = vsel %vm705_vm2, %v1540_v24, %v1542_v27  ;;  %1563 = vst.msk [vmem:[#allocation3] sm:$0xff] %vm708_vm3, %v1540_v24 }
 0x3cc   : > { %v1546_v13 = vpop.permute.xlu0 %1545  ;;  %2105 = vmatprep.subr.bf16.mxu1 %v3271_v56 }
 0x3cd   : > { %1567 = vst.msk [vmem:[#allocation3 + $0x20] sm:$0xff] %vm708_vm3, %v1546_v13 }
 0x3ce   : > { %v1548_v50 = vpop.permute.xlu1 %1547  ;;  %v3276_v32 = vld [vmem:[#allocation3 + $0x18] sm:$0xff] }
 0x3cf   : > { %v3279_v41 = vsel %vm705_vm2, %v1546_v13, %v1548_v50  ;;  %1605 = vrot.lane.b32.xlu0 %v3276_v32, %s2621_s24 }
 0x3d0   : > { %v1550_v51 = vpop.permute.xlu0 %1549 }
 0x3d1   : > { %v3284_v53 = vsel %vm705_vm2, %v1548_v50, %v1550_v51  ;;  %1570 = vst.msk [vmem:[#allocation3 + $0x38] sm:$0xff] %vm705_vm2, %v1550_v51 }
 0x3d2   : > { %v3287_v54 = vld [vmem:[#allocation3] sm:$0xff] }
 0x3d3   : > { %1799 = vrot.lane.b32.xlu0 %v3287_v54, %s2622_s25  ;;  %2106 = vmatpush1.bf16.msra.mxu1 %v3287_v54 }
 0x3d4   : > { %2107 = vmatprep.subr.bf16.mxu1 %v3279_v41  ;;  %v3293_v29 = vld [vmem:[#allocation3 + $0x20] sm:$0xff] }
 0x3d7   : > { %1603 = vrot.lane.b32.xlu0 %v3267_v10, %s2621_s24  ;;  %2108 = vmatpush1.bf16.msra.mxu1 %v3293_v29 }
 0x3d8   : > { %v3298_v57 = vld [vmem:[#allocation3 + $0x38] sm:$0xff] }
 0x3d9   : > { %1763 = vrot.lane.b32.xlu1 %v3298_v57, %s2620_s23 }
 0x3db   : > { %1653 = vrot.lane.b32.xlu0 %v3267_v10, %s2623_s26 }
 0x3dd   : > { %1755 = vrot.lane.b32.xlu1 %v3276_v32, %s2620_s23 }
 0x3df   : > { %1703 = vrot.lane.b32.xlu0 %v3267_v10, %s2625_s28 }
 0x3e1   : > { %1805 = vrot.lane.b32.xlu1 %v3276_v32, %s2622_s25 }
 0x3e3   : > { %1753 = vrot.lane.b32.xlu0 %v3267_v10, %s2620_s23 }
 0x3e5   : > { %1599 = vrot.lane.b32.xlu1 %v3287_v54, %s2621_s24 }
 0x3e7   : > { %1801 = vrot.lane.b32.xlu0 %v3271_v56, %s2622_s25 }
 0x3e9   : > { %1649 = vrot.lane.b32.xlu1 %v3287_v54, %s2623_s26 }
 0x3eb   : > { %1851 = vrot.lane.b32.xlu0 %v3271_v56, %s2624_s27 }
 0x3ed   : > { %1699 = vrot.lane.b32.xlu1 %v3287_v54, %s2625_s28 }
 0x3ef   : > { %1607 = vrot.lane.b32.xlu0 %v3293_v29, %s2621_s24 }
 0x3f1   : > { %1749 = vrot.lane.b32.xlu1 %v3287_v54, %s2620_s23 }
 0x3f3   : > { %1657 = vrot.lane.b32.xlu0 %v3293_v29, %s2623_s26 }
 0x3f5   : > { %1849 = vrot.lane.b32.xlu1 %v3287_v54, %s2624_s27 }
 0x3f7   : > { %1707 = vrot.lane.b32.xlu0 %v3293_v29, %s2625_s28 }
 0x3f9   : > { %1601 = vrot.lane.b32.xlu1 %v3271_v56, %s2621_s24 }
 0x3fb   : > { %1757 = vrot.lane.b32.xlu0 %v3293_v29, %s2620_s23 }
 0x3fd   : > { %1651 = vrot.lane.b32.xlu1 %v3271_v56, %s2623_s26 }
 0x3ff   : > { %1807 = vrot.lane.b32.xlu0 %v3293_v29, %s2622_s25 }
 0x401   : > { %1701 = vrot.lane.b32.xlu1 %v3271_v56, %s2625_s28 }
 0x403   : > { %1609 = vrot.lane.b32.xlu0 %v3279_v41, %s2621_s24 }
 0x405   : > { %1751 = vrot.lane.b32.xlu1 %v3271_v56, %s2620_s23 }
 0x407   : > { %1813 = vrot.lane.b32.xlu0 %v3298_v57, %s2622_s25 }
 0x409   : > { %1803 = vrot.lane.b32.xlu1 %v3267_v10, %s2622_s25 }
 0x40b   : > { %1659 = vrot.lane.b32.xlu0 %v3279_v41, %s2623_s26 }
 0x40d   : > { %1853 = vrot.lane.b32.xlu1 %v3267_v10, %s2624_s27 }
 0x40f   : > { %1857 = vrot.lane.b32.xlu0 %v3293_v29, %s2624_s27 }
 0x411   : > { %1611 = vrot.lane.b32.xlu1 %v3284_v53, %s2621_s24 }
 0x413   : > { %1709 = vrot.lane.b32.xlu0 %v3279_v41, %s2625_s28 }
 0x415   : > { %1613 = vrot.lane.b32.xlu1 %v3298_v57, %s2621_s24 }
 0x417   : > { %1901 = vrot.lane.b32.xlu0 %v3271_v56, %s2626_s29 }
 0x419   : > { %1661 = vrot.lane.b32.xlu1 %v3284_v53, %s2623_s26 }
 0x41b   : > { %1759 = vrot.lane.b32.xlu0 %v3279_v41, %s2620_s23 }
 0x41d   : > { %1855 = vrot.lane.b32.xlu1 %v3276_v32, %s2624_s27 }
 0x41f   : > { %1655 = vrot.lane.b32.xlu0 %v3276_v32, %s2623_s26 }
 0x421   : > { %1711 = vrot.lane.b32.xlu1 %v3284_v53, %s2625_s28 }
 0x423   : > { %1809 = vrot.lane.b32.xlu0 %v3279_v41, %s2622_s25 }
 0x425   : > { %1903 = vrot.lane.b32.xlu1 %v3267_v10, %s2626_s29 }
 0x427   : > { %1863 = vrot.lane.b32.xlu0 %v3298_v57, %s2624_s27 }
 0x429   : > { %1761 = vrot.lane.b32.xlu1 %v3284_v53, %s2620_s23  ;;  %s3570_s23 = scalar_lea.vmem %s3604_s6, %s2543_s13 }
 0x42b   : > { %1861 = vrot.lane.b32.xlu0 %v3284_v53, %s2624_s27 }
 0x42d   : > { %1899 = vrot.lane.b32.xlu1 %v3287_v54, %s2626_s29 }
 0x42f   : > { %1907 = vrot.lane.b32.xlu0 %v3293_v29, %s2626_s29 }
 0x431   : > { %1811 = vrot.lane.b32.xlu1 %v3284_v53, %s2622_s25 }
 0x433   : > { %1911 = vrot.lane.b32.xlu0 %v3284_v53, %s2626_s29 }
 0x435   : > { %1663 = vrot.lane.b32.xlu1 %v3298_v57, %s2623_s26 }
 0x437   : > { %1705 = vrot.lane.b32.xlu0 %v3276_v32, %s2625_s28 }
 0x439   : > { %1859 = vrot.lane.b32.xlu1 %v3279_v41, %s2624_s27 }
 0x43b   : > { %1713 = vrot.lane.b32.xlu0 %v3298_v57, %s2625_s28 }
 0x43d   : > { %1905 = vrot.lane.b32.xlu1 %v3276_v32, %s2626_s29 }
 0x43f   : > { %1953 = vrot.lane.b32.xlu0 %v3267_v10, %s2627_s9 }
 0x441   : > { %1909 = vrot.lane.b32.xlu1 %v3279_v41, %s2626_s29  ;;  %v1606_v28 = vpop.permute.xlu0 %1605 }
 0x443   : > { %1959 = vrot.lane.b32.xlu0 %v3279_v41, %s2627_s9 }
 0x445   : > { %1913 = vrot.lane.b32.xlu1 %v3298_v57, %s2626_s29  ;;  %v1800_v4 = vpop.permute.xlu0 %1799 }
 0x447   : > { %1957 = vrot.lane.b32.xlu0 %v3293_v29, %s2627_s9 }
 0x449   : > { %1951 = vrot.lane.b32.xlu1 %v3271_v56, %s2627_s9  ;;  %v1604_v34 = vpop.permute.xlu0 %1603 }
 0x44a   : > { %v3418_v59 = vsel %vm800_vm8, %v1604_v34, %v1606_v28 }
 0x44b   : > { %v3420_v1 = vpop.permute.xlu1 %1763  ;;  %1963 = vrot.lane.b32.xlu0 %v3298_v57, %s2627_s9 }
 0x44d   : > { %1949 = vrot.lane.b32.xlu1 %v3287_v54, %s2627_s9  ;;  %v3429_v7 = vpop.permute.xlu0 %1653 }
 0x44f   : > { %v1756_v35 = vpop.permute.xlu1 %1755  ;;  %2056 = vperm.xlu0 %2577, %v2046_v60  }
 0x451   : > { %1961 = vrot.lane.b32.xlu1 %v3284_v53, %s2627_s9  ;;  %v3436_v62 = vpop.permute.xlu0 %1703 }
 0x453   : > { %v3438_v3 = vpop.permute.xlu1 %1805  ;;  %2066 = vperm.xlu0 %2577, %v2048_v2  }
 0x455   : > { %1955 = vrot.lane.b32.xlu1 %v3276_v32, %s2627_s9  ;;  %v3442_v11 = vpop.permute.xlu0 %1753 }
 0x456   : > { %v1767_v38 = vsel %vm953_vm11, %v3442_v11, %v1756_v35 }
 0x457   : > { %v1600_v45 = vpop.permute.xlu1 %1599  ;;  %2463 = vmatprep.subr.bf16.mxu0 %v1767_v38 }
 0x458   : > { %2464 = vmatpush3.bf16.msra.mxu0 %v3267_v10 }
 0x459   : > { %2051 = vperm.xlu1 %2578, %v2045_v5   ;;  %v3450_v14 = vpop.permute.xlu0 %1801 }
 0x45a   : > { %v3454_v19 = vsel %vm1004_vm12, %v1800_v4, %v3450_v14 }
 0x45b   : > { %v1650_v37 = vpop.permute.xlu1 %1649 }
 0x45d   : > { %2061 = vperm.xlu1 %2578, %v2047_v9   ;;  %v3459_v15 = vpop.permute.xlu0 %1851 }
 0x45f   : > { %v1700_v52 = vpop.permute.xlu1 %1699 }
 0x461   : > { %v1608_v22 = vpop.permute.xlu0 %1607 }
 0x463   : > { %v1750_v23 = vpop.permute.xlu1 %1749 }
 0x465   : > { %v1658_v40 = vpop.permute.xlu0 %1657 }
 0x467   : > { %v1850_v55 = vpop.permute.xlu1 %1849 }
 0x468   : > { %v3463_v31 = vsel %vm1055_vm13, %v1850_v55, %v3459_v15 }
 0x469   : > { %v1708_v33 = vpop.permute.xlu0 %1707 }
 0x46b   : > { %v1602_v16 = vpop.permute.xlu1 %1601 }
 0x46c   : > { %v1615_v39 = vsel %vm800_vm8, %v1600_v45, %v1602_v16  ;;  %v1616_v25 = vsel %vm800_vm8, %v1602_v16, %v1604_v34 }
 0x46d   : > { %2109 = vmatprep.subr.bf16.mxu1 %v1616_v25  ;;  %v1758_v6 = vpop.permute.xlu0 %1757 }
 0x46e   : > { %2110 = vmatpush1.bf16.msra.mxu1 %v1615_v39 }
 0x46f   : > { %v1652_v61 = vpop.permute.xlu1 %1651 }
 0x470   : > { %v1666_v51 = vsel %vm851_vm9, %v1652_v61, %v3429_v7  ;;  %v1665_v29 = vsel %vm851_vm9, %v1650_v37, %v1652_v61 }
 0x471   : > { %v3467_v26 = vpop.permute.xlu0 %1807 }
 0x473   : > { %v1702_v46 = vpop.permute.xlu1 %1701 }
 0x474   : > { %v1716_v60 = vsel %vm902_vm10, %v1702_v46, %v3436_v62  ;;  %v1715_v2 = vsel %vm902_vm10, %v1700_v52, %v1702_v46 }
 0x475   : > { %v1610_v49 = vpop.permute.xlu0 %1609 }
 0x476   : > { %v1618_v32 = vsel %vm800_vm8, %v1608_v22, %v1610_v49 }
 0x477   : > { %v1752_v12 = vpop.permute.xlu1 %1751 }
 0x478   : > { %v1766_v22 = vsel %vm953_vm11, %v1752_v12, %v3442_v11  ;;  %v1765_v55 = vsel %vm953_vm11, %v1750_v23, %v1752_v12 }
 0x479   : > { %v1814_v27 = vpop.permute.xlu0 %1813 }
 0x47b   : > { %v1804_v44 = vpop.permute.xlu1 %1803 }
 0x47c   : > { %v1816_v11 = vsel %vm1004_vm12, %v3450_v14, %v1804_v44  ;;  %v1817_v23 = vsel %vm1004_vm12, %v1804_v44, %v3438_v3 }
 0x47d   : > { %v1660_v10 = vpop.permute.xlu0 %1659 }
 0x47e   : > { %v1668_v4 = vsel %vm851_vm9, %v1658_v40, %v1660_v10 }
 0x47f   : > { %v3469_v24 = vpop.permute.xlu1 %1853 }
 0x481   : > { %v3471_v56 = vpop.permute.xlu0 %1857 }
 0x483   : > { %v1612_v13 = vpop.permute.xlu1 %1611 }
 0x484   : > { %v1619_v50 = vsel %vm800_vm8, %v1610_v49, %v1612_v13 }
 0x485   : > { %2111 = vmatprep.subr.bf16.mxu1 %v1619_v50  ;;  %v1710_v41 = vpop.permute.xlu0 %1709 }
 0x486   : > { %2112 = vmatpush1.bf16.msra.mxu1 %v1618_v32  ;;  %v1718_v9 = vsel %vm902_vm10, %v1708_v33, %v1710_v41 }
 0x487   : > { %v1614_v54 = vpop.permute.xlu1 %1613  ;;  %2113 = vmatprep.subr.bf16.mxu1 %v1666_v51 }
 0x489   : > { %v3478_v57 = vpop.permute.xlu0 %1901 }
 0x48a   : > { %2114 = vmatpush1.bf16.msra.mxu1 %v1665_v29 }
 0x48b   : > { %v3480_v58 = vpop.permute.xlu1 %1661 }
 0x48c   : > { %v1669_v28 = vsel %vm851_vm9, %v1660_v10, %v3480_v58 }
 0x48d   : > { %2115 = vmatprep.subr.bf16.mxu1 %v1669_v28  ;;  %v1760_v34 = vpop.permute.xlu0 %1759  ;;  %v2587_v28 = vld [vmem:[%s3602_s4] ss:$12 sps:$4 sm:$0xff]  }
 0x48e   : > { %2116 = vmatpush1.bf16.msra.mxu1 %v1668_v4  ;;  %v1768_v33 = vsel %vm953_vm11, %v1758_v6, %v1760_v34 }
 0x48f   : > { %v1856_v35 = vpop.permute.xlu1 %1855  ;;  %2117 = vmatprep.subr.bf16.mxu1 %v1716_v60 }
 0x491   : > { %v1656_v38 = vpop.permute.xlu0 %1655 }
 0x492   : > { %2118 = vmatpush1.bf16.msra.mxu1 %v1715_v2 }
 0x493   : > { %v3488_v5 = vpop.permute.xlu1 %1711 }
 0x494   : > { %v1719_v45 = vsel %vm902_vm10, %v1710_v41, %v3488_v5 }
 0x495   : > { %2119 = vmatprep.subr.bf16.mxu1 %v1719_v45  ;;  %v1810_v37 = vpop.permute.xlu0 %1809  ;;  %v2592_v45 = vld [vmem:[%s3602_s4 + $0x18] ss:$12 sps:$4 sm:$0xff]  }
 0x496   : > { %2120 = vmatpush1.bf16.msra.mxu1 %v1718_v9  ;;  %v1818_v14 = vsel %vm1004_vm12, %v3467_v26, %v1810_v37 }
 0x497   : > { %v1904_v40 = vpop.permute.xlu1 %1903  ;;  %2121 = vmatprep.subr.bf16.mxu1 %v1766_v22 }
 0x499   : > { %v1864_v52 = vpop.permute.xlu0 %1863 }
 0x49a   : > { %2122 = vmatpush1.bf16.msra.mxu1 %v1765_v55  ;;  %v2593_v55 = vld [vmem:[%s3602_s4 + $0x8] ss:$12 sps:$4 sm:$0xff]  }
 0x49b   : > { %v1762_v16 = vpop.permute.xlu1 %1761 }
 0x49c   : > { %v1769_v39 = vsel %vm953_vm11, %v1760_v34, %v1762_v16  ;;  %v1770_v25 = vsel %vm953_vm11, %v1762_v16, %v3420_v1 }
 0x49d   : > { %2123 = vmatprep.subr.bf16.mxu1 %v1769_v39  ;;  %2465 = vmatprep.subr.bf16.mxu0 %v1770_v25  ;;  %v1862_v61 = vpop.permute.xlu0 %1861 }
 0x49e   : > { %2124 = vmatpush1.bf16.msra.mxu1 %v1768_v33  ;;  %2466 = vmatpush3.bf16.msra.mxu0 %v3284_v53  ;;  %v1620_v53 = vsel %vm800_vm8, %v1612_v13, %v1614_v54  ;;  %v1870_v26 = vsel %vm1055_vm13, %v1862_v61, %v1864_v52 }
 0x49f   : > { %v1900_v46 = vpop.permute.xlu1 %1899  ;;  %2125 = vmatprep.subr.bf16.mxu1 %v1816_v11  ;;  %2467 = vmatprep.subr.bf16.mxu0 %v1817_v23 }
 0x4a0   : > { %v1915_v51 = vsel %vm1106_vm14, %v1900_v46, %v3478_v57 }
 0x4a1   : > { %v1908_v49 = vpop.permute.xlu0 %1907 }
 0x4a2   : > { %2126 = vmatpush1.bf16.msra.mxu1 %v3454_v19  ;;  %2468 = vmatpush3.bf16.msra.mxu0 %v3418_v59  ;;  %v1866_v19 = vsel %vm1055_vm13, %v3459_v15, %v3469_v24  ;;  %v1867_v59 = vsel %vm1055_vm13, %v3469_v24, %v1856_v35 }
 0x4a3   : > { %v1812_v1 = vpop.permute.xlu1 %1811 }
 0x4a4   : > { %v1819_v6 = vsel %vm1004_vm12, %v1810_v37, %v1812_v1  ;;  %v1820_v12 = vsel %vm1004_vm12, %v1812_v1, %v1814_v27  ;;  %v1667_v27 = vsel %vm851_vm9, %v3429_v7, %v1656_v38  ;;  %v1916_v7 = vsel %vm1106_vm14, %v3478_v57, %v1904_v40  ;;  %v2590_v57 = vld [vmem:[%s3602_s4 + $0x1c] ss:$12 sps:$4 sm:$0xff]  }
 0x4a5   : > { %2127 = vmatprep.subr.bf16.mxu1 %v1819_v6  ;;  %2469 = vmatprep.subr.bf16.mxu0 %v1820_v12  ;;  %v1912_v3 = vpop.permute.xlu0 %1911 }
 0x4a6   : > { %2128 = vmatpush1.bf16.msra.mxu1 %v1818_v14  ;;  %2470 = vmatpush3.bf16.msra.mxu0 %v1620_v53 }
 0x4a7   : > { %v1664_v44 = vpop.permute.xlu1 %1663  ;;  %2129 = vmatprep.subr.bf16.mxu1 %v1866_v19  ;;  %2471 = vmatprep.subr.bf16.mxu0 %v1867_v59 }
 0x4a8   : > { %v1670_v24 = vsel %vm851_vm9, %v3480_v58, %v1664_v44 }
 0x4a9   : > { %v1706_v10 = vpop.permute.xlu0 %1705 }
 0x4aa   : > { %2130 = vmatpush1.bf16.msra.mxu1 %v3463_v31  ;;  %2472 = vmatpush3.bf16.msra.mxu0 %v1667_v27 }
 0x4ab   : > { %v1860_v13 = vpop.permute.xlu1 %1859  ;;  %2473 = vmatprep.subr.bf16.mxu0 %v1870_v26 }
 0x4ac   : > { %v1868_v15 = vsel %vm1055_vm13, %v3471_v56, %v1860_v13  ;;  %v1869_v50 = vsel %vm1055_vm13, %v1860_v13, %v1862_v61  ;;  %v1717_v56 = vsel %vm902_vm10, %v3436_v62, %v1706_v10  ;;  %v2594_v61 = vld [vmem:[%s3602_s4 + $0x20] ss:$12 sps:$4 sm:$0xff]  }
 0x4ad   : > { %2131 = vmatprep.subr.bf16.mxu1 %v1869_v50  ;;  %v1714_v32 = vpop.permute.xlu0 %1713 }
 0x4ae   : > { %2132 = vmatpush1.bf16.msra.mxu1 %v1868_v15  ;;  %2474 = vmatpush3.bf16.msra.mxu0 %v1670_v24  ;;  %v1720_v60 = vsel %vm902_vm10, %v3488_v5, %v1714_v32 }
 0x4af   : > { %v1906_v31 = vpop.permute.xlu1 %1905  ;;  %2133 = vmatprep.subr.bf16.mxu1 %v1916_v7 }
 0x4b0   : > { %v1917_v41 = vsel %vm1106_vm14, %v1904_v40, %v1906_v31 }
 0x4b1   : > { %2475 = vmatprep.subr.bf16.mxu0 %v1917_v41  ;;  %v1954_v4 = vpop.permute.xlu0 %1953 }
 0x4b2   : > { %2134 = vmatpush1.bf16.msra.mxu1 %v1915_v51  ;;  %2476 = vmatpush3.bf16.msra.mxu0 %v1717_v56 }
 0x4b3   : > { %v1910_v54 = vpop.permute.xlu1 %1909 }
 0x4b4   : > { %v1918_v29 = vsel %vm1106_vm14, %v1908_v49, %v1910_v54  ;;  %v1919_v58 = vsel %vm1106_vm14, %v1910_v54, %v1912_v3 }
 0x4b5   : > { %2135 = vmatprep.subr.bf16.mxu1 %v1919_v58  ;;  %v1960_v2 = vpop.permute.xlu0 %1959 }
 0x4b6   : > { %2136 = vmatpush1.bf16.msra.mxu1 %v1918_v29 }
 0x4b7   : > { %v1914_v62 = vpop.permute.xlu1 %1913 }
 0x4b8   : > { %v1920_v34 = vsel %vm1106_vm14, %v1912_v3, %v1914_v62 }
 0x4b9   : > { %2138 = vmatmul.mubr.bf16.vlgmr.msra.gmra.mrb[12].mxu1 %v2587_v28  ;;  %2477 = vmatprep.subr.bf16.mxu0 %v1920_v34  ;;  %v1958_v5 = vpop.permute.xlu0 %1957 }
 0x4ba   : > { %2478 = vmatpush3.bf16.msra.mxu0 %v1720_v60  ;;  %2147 = vmatprep.mubr.bf16.mxu1 %v2590_v57  ;;  %v1968_v52 = vsel %vm1157_vm15, %v1958_v5, %v1960_v2 }
 0x4bb   : > { %v1952_v35 = vpop.permute.xlu1 %1951 }
 0x4bc   : > { %v1966_v38 = vsel %vm1157_vm15, %v1952_v35, %v1954_v4 }
 0x4bd   : > { %2158 = vmatprep.subr.bf16.mxu1 %v1966_v38  ;;  %2244 = vmatmul.mubr.bf16.vlgmr.msra.gmra.mrb[8].mxu0 %v2587_v28  ;;  %v1964_v25 = vpop.permute.xlu0 %1963 }
 0x4be   : > { %2251 = vmatprep.mubr.bf16.mxu0 %v2590_v57 }
 0x4bf   : > { %v1950_v9 = vpop.permute.xlu1 %1949 }
 0x4c0   : > { %v1965_v37 = vsel %vm1157_vm15, %v1950_v9, %v1952_v35 }
 0x4c1   : > { %2148 = vmatmul.mubr.bf16.gmra.mrb[16].mxu1 %v2592_v45 }
 0x4c2   : > { %2159 = vmatpush1.bf16.msra.mxu1 %v1965_v37  ;;  %2190 = vmatprep.mubr.bf16.mxu1 %v2615_v8 }
 0x4c3   : > { %v1962_v22 = vpop.permute.xlu1 %1961 }
 0x4c4   : > { %v1969_v40 = vsel %vm1157_vm15, %v1960_v2, %v1962_v22  ;;  %v1970_v33 = vsel %vm1157_vm15, %v1962_v22, %v1964_v25 }
 0x4c5   : > { %2160 = vmatprep.subr.bf16.mxu1 %v1969_v40  ;;  %2252 = vmatmul.mubr.bf16.gmra.mrb[12].mxu0 %v2592_v45 }
 0x4c6   : > { %2161 = vmatpush1.bf16.msra.mxu1 %v1968_v52  ;;  %2507 = vmatprep.mubr.msk.bf16.mxu0 %vm1292_vm0, %v2593_v55 }
 0x4c7   : > { %v1956_v16 = vpop.permute.xlu1 %1955 }
 0x4c8   : > { %v1967_v39 = vsel %vm1157_vm15, %v1954_v4, %v1956_v16 }
 0x4c9   : > { %2424 = vmatmul.mubr.msk.bf16.vlgmr.msra.gmra.mrb[12].mxu1 %vm1292_vm0, %v2593_v55  ;;  %2503 = vmatprep.subr.bf16.mxu0 %v1967_v39 }
 0x4ca   : > { %2504 = vmatpush3.bf16.msra.mxu0 %v1967_v39  ;;  %2200 = vmatprep.mubr.bf16.mxu1 %v2615_v8 }
 0x4cb   : > { %2505 = vmatprep.subr.bf16.mxu0 %v1970_v33 }
 0x4ce   : > { %2506 = vmatpush3.bf16.msra.mxu0 %v1970_v33  ;;  %v2057_v27 = vpop.permute.xlu0 %2056 }
 0x4d1   : > { %2425 = vmatmul.mubr.msk.bf16.gmra.mrb[16].mxu1 %vm1292_vm0, %v2594_v61  ;;  %2508 = vmatmul.mubr.msk.bf16.vlgmr.msra.gmra.mrb[16].mxu0 %vm1292_vm0, %v2594_v61 }
 0x4d2   : > { %v2067_v29 = vpop.permute.xlu0 %2066 }
 0x4d8   : > { %v2052_v19 = vpop.permute.xlu1 %2051 }
 0x4dc   : > { %v2062_v56 = vpop.permute.xlu1 %2061 }
 0x590   : > { %v2479_v11 = vpop.f32.mrb[8].mxu0 }
 0x591   : > { %v2480_v23 = vpop.f32.mrb[9].mxu0 }
 0x592   : > { %v2481_v46 = vadd.f32 %v2480_v23, %v2479_v11  ;;  %v2482_v49 = vpop.f32.mrb[10].mxu0 }
 0x593   : > { %v2483_v1 = vpop.f32.mrb[11].mxu0 }
 0x594   : > { %v2484_v6 = vadd.f32 %v2483_v1, %v2482_v49  ;;  %v2246_v34 = vadd.f32 %v2481_v46, %v2052_v19 }
 0x596   : > { %v2249_v37 = vadd.f32 %v2484_v6, %v2057_v27 }
 0x598   : > { %v2485_v12 = vpop.f32.mrb[12].mxu0 }
 0x599   : > { %v2486_v53 = vpop.f32.mrb[13].mxu0 }
 0x59a   : > { %v2487_v8 = vadd.f32 %v2486_v53, %v2485_v12  ;;  %v2488_v14 = vpop.f32.mrb[14].mxu0 }
 0x59b   : > { %v2489_v3 = vpop.f32.mrb[15].mxu0 }
 0x59c   : > { %v2490_v59 = vadd.f32 %v2489_v3, %v2488_v14  ;;  %v2192_v44 = vpop.f32.mrb[12].mxu1  ;;  %v2254_v28 = vadd.f32 %v2487_v8, %v2062_v56 }
 0x59d   : > { %v2519_v10 = vadd.f32 %v2192_v44, %v2052_v19  ;;  %v2194_v26 = vpop.f32.mrb[13].mxu1 }
 0x59e   : > { %v2520_v13 = vadd.f32 %v2194_v26, %v2052_v19  ;;  %v2196_v15 = vpop.f32.mrb[14].mxu1 }
 0x59f   : > { %v2309_v50 = vadd.f32 %v2519_v10, %v2855_v20  ;;  %v2521_v24 = vadd.f32 %v2196_v15, %v2057_v27  ;;  %v2198_v7 = vpop.f32.mrb[15].mxu1 }
 0x5a0   : > { %v2310_v31 = vadd.f32 %v2520_v13, %v2822_v63  ;;  %v2522_v32 = vadd.f32 %v2198_v7, %v2057_v27 }
 0x5a1   : > { %v2321_v41 = vmax.f32 %v2309_v50, 0.0  ;;  %v2312_v51 = vadd.f32 %v2521_v24, %v2859_v21  ;;  %v2257_v21 = vadd.f32 %v2490_v59, %v2067_v29 }
 0x5a2   : > { %v2322_v54 = vmax.f32 %v2310_v31, 0.0  ;;  %v2313_v20 = vadd.f32 %v2522_v32, %v2826_v0 }
 0x5a3   : > { %2333 = vst [vmem:[%s3570_s23] sm:$0xff] %v2321_v41  ;;  %v2324_v58 = vmax.f32 %v2312_v51, 0.0 }
 0x5a4   : > { %2334 = vst [vmem:[%s3570_s23 + $0x8] sm:$0xff] %v2322_v54  ;;  %v2325_v4 = vmax.f32 %v2313_v20, 0.0  ;;  %v2202_v57 = vpop.f32.mrb[16].mxu1  ;;  %v2509_v62 = vpop.f32.mrb[16].mxu0 }
 0x5a5   : > { %2336 = vst [vmem:[%s3570_s23 + $0x18] sm:$0xff] %v2324_v58  ;;  %v2523_v63 = vadd.f32 %v2202_v57, %v2062_v56  ;;  %v2303_v60 = vadd.f32 %v2509_v62, %v2254_v28  ;;  %v2204_v35 = vpop.f32.mrb[17].mxu1  ;;  %v2294_v2 = vpop.f32.mrb[17].mxu0 }
 0x5a6   : > { %2337 = vst [vmem:[%s3570_s23 + $0x20] sm:$0xff] %v2325_v4  ;;  %v2524_v38 = vadd.f32 %v2204_v35, %v2062_v56  ;;  %v2295_v45 = vadd.f32 %v2294_v2, %v2246_v34  ;;  %v2206_v0 = vpop.f32.mrb[18].mxu1  ;;  %v2510_v9 = vpop.f32.mrb[18].mxu0 }
 0x5a7   : > { %v2315_v5 = vadd.f32 %v2523_v63, %v2883_v30  ;;  %v2317_v22 = vadd.f32 %v2303_v60, %v2907_v47  ;;  %v2525_v40 = vadd.f32 %v2206_v0, %v2067_v29  ;;  %v2306_v55 = vadd.f32 %v2510_v9, %v2257_v21  ;;  %v2208_v52 = vpop.f32.mrb[19].mxu1  ;;  %v2297_v16 = vpop.f32.mrb[19].mxu0 }
 0x5a8   : > { %v2316_v39 = vadd.f32 %v2524_v38, %v2896_v42  ;;  %v2311_v25 = vadd.f32 %v2295_v45, %v2845_v17  ;;  %v2526_v33 = vadd.f32 %v2208_v52, %v2067_v29  ;;  %v2298_v61 = vadd.f32 %v2297_v16, %v2249_v37 }
 0x5a9   : > { %v2327_v11 = vmax.f32 %v2315_v5, 0.0  ;;  %v2329_v23 = vmax.f32 %v2317_v22, 0.0  ;;  %v2318_v30 = vadd.f32 %v2525_v40, %v2887_v36  ;;  %v2320_v47 = vadd.f32 %v2306_v55, %v2911_v48 }
 0x5aa   : > { %v2328_v46 = vmax.f32 %v2316_v39, 0.0  ;;  %v2323_v49 = vmax.f32 %v2311_v25, 0.0  ;;  %v2319_v42 = vadd.f32 %v2526_v33, %v2900_v43  ;;  %v2314_v1 = vadd.f32 %v2298_v61, %v2849_v18 }
 0x5ab   : > { %2339 = vst [vmem:[%s3570_s23 + $0x30] sm:$0xff] %v2327_v11  ;;  %2341 = vst [vmem:[%s3570_s23 + $0x40] sm:$0xff] %v2329_v23  ;;  %v2330_v17 = vmax.f32 %v2318_v30, 0.0  ;;  %v2332_v6 = vmax.f32 %v2320_v47, 0.0 }
 0x5ac   : > { %2340 = vst [vmem:[%s3570_s23 + $0x38] sm:$0xff] %v2328_v46  ;;  %2335 = vst [vmem:[%s3570_s23 + $0x10] sm:$0xff] %v2323_v49  ;;  %v2331_v12 = vmax.f32 %v2319_v42, 0.0  ;;  %v2326_v53 = vmax.f32 %v2314_v1, 0.0 }
 0x5ad   : > { %2342 = vst [vmem:[%s3570_s23 + $0x48] sm:$0xff] %v2330_v17  ;;  %2344 = vst [vmem:[%s3570_s23 + $0x58] sm:$0xff] %v2332_v6 }
 0x5ae   : > { %2343 = vst [vmem:[%s3570_s23 + $0x50] sm:$0xff] %v2331_v12  ;;  %2338 = vst [vmem:[%s3570_s23 + $0x28] sm:$0xff] %v2326_v53 }
 0x5af PF: > { %s16_s21 = sadd.s32 1, %s2601_s21  }
 0x5b0   : > { %p13_p4 = scmp.ge.s32.totalorder %s16_s21, 4  }
 0x5b2   :  { %15 = sbr.rel (!%p13_p4) target bundleno = 1 (0x1), region = 74 }

</bundles_post_ra>
